<compile_context>
chip_gen: v5e
topology: v5e:2x2
jax: 0.10.0
libtpu: 0.0.40
codegen_flags: <defaults>
</compile_context>

<pallas_src>
import functools

import jax
import jax.numpy as jnp
from jax import lax
from jax.experimental import pallas as pl
from jax.experimental.pallas import tpu as pltpu

EPS = 1e-5
LANE = 128            # TPU lane width: channel dims are padded to a multiple of this.


def _round_up(n, m):
    return (n + m - 1) // m * m


def _row_tile(hout, wout, target_m=1024):
    """Largest divisor tr of hout with tr*wout <= target, preferring tiles whose
    flattened M is sublane-aligned (multiple of 8) or the full image."""
    divs = [t for t in range(1, hout + 1) if hout % t == 0]
    ok = [t for t in divs
          if t * wout <= max(target_m, wout) and ((t * wout) % 8 == 0 or t == hout)]
    if not ok:
        ok = [t for t in divs if (t * wout) % 8 == 0 or t == hout]
    return max(ok)


@functools.lru_cache(maxsize=None)
def _vmem_limit():
    try:
        cap = int(pltpu.get_tpu_info().vmem_capacity_bytes)
        return max(16 * 1024 * 1024, min(cap * 7 // 8, 100 * 1024 * 1024))
    except Exception:
        return 32 * 1024 * 1024


# ------------------------------- Pallas kernels ------------------------------ #

def _make_s1_kernel(mode):
    """Stride-1 3x3 conv (BN folded into weights) + bias + optional residual
    (identity add OR fused 1x1-projection) + ReLU.

    Input is the UNPADDED image; the 1-px halo is built once per batch element
    into a persistent VMEM scratch (row grid axis is 'arbitrary' so the r==0
    step always precedes the others of the same batch element).
    """

    def kernel(*refs):
        if mode == "add":
            x_ref, wf_ref, bias_ref, id_ref, o_ref, acc_ref, pad_ref = refs
        elif mode == "proj":
            x_ref, wf_ref, bias_ref, xs_ref, wd_ref, o_ref, acc_ref, pad_ref = refs
        else:
            x_ref, wf_ref, bias_ref, o_ref, acc_ref, pad_ref = refs

        hin, win, cinp = x_ref.shape
        m, coutp = o_ref.shape
        tr = m // win
        r0 = pl.program_id(1) * tr

        # Build the spatially padded image once per batch element (the image
        # block index is constant over the row axis, so this buffer persists).
        @pl.when(pl.program_id(1) == 0)
        def _():
            zc = jnp.zeros((hin, 1, cinp), x_ref.dtype)
            zr = jnp.zeros((1, win + 2, cinp), x_ref.dtype)
            xw = jnp.concatenate([zc, x_ref[...], zc], axis=1)      # W halo
            pad_ref[...] = jnp.concatenate([zr, xw, zr], axis=0)    # H halo

        # 3 fused-K matmuls: per ky, concat the 3 kx windows on the lane axis.
        for ky in range(3):
            slab = pad_ref[pl.ds(r0 + ky, tr), :, :]                # (tr, win+2, cinp)
            patch = jnp.concatenate(
                [slab[:, 0:win, :], slab[:, 1:win + 1, :], slab[:, 2:win + 2, :]],
                axis=-1).reshape(m, 3 * cinp)
            d = jnp.dot(patch, wf_ref[ky], preferred_element_type=jnp.float32)
            if ky == 0:
                acc_ref[...] = d
            else:
                acc_ref[...] += d

        # f32 epilogue: bias (BN scale already folded into weights), residual, ReLU.
        y = acc_ref[...] + bias_ref[...]
        if mode == "add":
            # Residual uses the channel-padded bf16 activation (consistent with
            # the bf16 MXU path); error stays well within bf16-level tolerance.
            y = y + id_ref[...].astype(jnp.float32)
        elif mode == "proj":
            # Fused 1x1 downsample conv (BN scale folded into wd, bias merged).
            y = y + jnp.dot(xs_ref[...], wd_ref[...], preferred_element_type=jnp.float32)
        o_ref[...] = jnp.maximum(y, 0.0).astype(o_ref.dtype)

    return kernel


def _make_s2_kernel():
    """Stride-2 3x3 conv (BN folded into weights) + bias + ReLU.

    Input is the padded image split into 2x2 (row x column) phases so every tap
    is a contiguous slice (direct strided conv, no over-read / relayout)."""

    def kernel(p00_ref, p01_ref, p10_ref, p11_ref, wf_ref, bias_ref,
               o_ref, acc_ref):
        hp, wp, cinp = p00_ref.shape             # hp = h/2+1, wp = w/2+1
        m, coutp = o_ref.shape
        wout = wp - 1
        tr = m // wout
        r0 = pl.program_id(1) * tr
        col_phases = ((p00_ref, p01_ref), (p10_ref, p11_ref))

        for ky in range(3):
            a_ref, b_ref = col_phases[ky & 1]    # ky=0,2 -> even rows; ky=1 -> odd
            off = 1 if ky == 2 else 0
            s0 = a_ref[pl.ds(r0 + off, tr), :, :]        # column phase 0 (kx=0,2)
            s1 = b_ref[pl.ds(r0 + off, tr), :, :]        # column phase 1 (kx=1)
            patch = jnp.concatenate(
                [s0[:, 0:wout, :], s1[:, 0:wout, :], s0[:, 1:wout + 1, :]],
                axis=-1).reshape(m, 3 * cinp)
            d = jnp.dot(patch, wf_ref[ky], preferred_element_type=jnp.float32)
            if ky == 0:
                acc_ref[...] = d
            else:
                acc_ref[...] += d

        y = acc_ref[...] + bias_ref[...]
        o_ref[...] = jnp.maximum(y, 0.0).astype(o_ref.dtype)

    return kernel


# ------------------------------ pallas_call wrappers -------------------------- #

def _conv_s1(x_img, wf, bias, *, mode="none", identity=None, proj=None,
             out_dtype=jnp.bfloat16):
    """Stride-1 conv block. x_img: (N, H, W, Cin_pad). Returns (N, H, W, Cout_pad)."""
    n, hi, wi, cinp = x_img.shape
    coutp = wf.shape[-1]
    tr = _row_tile(hi, wi)
    m = tr * wi
    grid = (n, hi // tr)

    in_specs = [pl.BlockSpec((None, hi, wi, cinp), lambda b, r: (b, 0, 0, 0)),
                pl.BlockSpec(wf.shape, lambda b, r: (0, 0, 0)),
                pl.BlockSpec(bias.shape, lambda b, r: (0, 0))]
    args = [x_img, wf, bias]
    if mode == "add":
        in_specs.append(pl.BlockSpec((None, m, coutp), lambda b, r: (b, r, 0)))
        args.append(identity)
    elif mode == "proj":
        xs, wd = proj
        in_specs += [pl.BlockSpec((None, m, xs.shape[-1]), lambda b, r: (b, r, 0)),
                     pl.BlockSpec(wd.shape, lambda b, r: (0, 0))]
        args += [xs, wd]

    out = pl.pallas_call(
        _make_s1_kernel(mode),
        out_shape=jax.ShapeDtypeStruct((n, hi * wi, coutp), out_dtype),
        grid=grid,
        in_specs=in_specs,
        out_specs=pl.BlockSpec((None, m, coutp), lambda b, r: (b, r, 0)),
        scratch_shapes=[pltpu.VMEM((m, coutp), jnp.float32),
                        pltpu.VMEM((hi + 2, wi + 2, cinp), x_img.dtype)],
        compiler_params=pltpu.CompilerParams(
            # Row axis must be 'arbitrary': the halo scratch is built at r==0.
            dimension_semantics=("parallel", "arbitrary"),
            vmem_limit_bytes=_vmem_limit()),
    )(*args)
    return out.reshape(n, hi, wi, coutp)


def _conv_s2(phases, wf, bias, *, hout, wout, out_dtype=jnp.bfloat16):
    """Stride-2 conv block from 2x2 phase arrays. Returns (N, hout, wout, Cout_pad)."""
    n, hp, wp, cinp = phases[0].shape
    coutp = wf.shape[-1]
    tr = _row_tile(hout, wout)
    m = tr * wout
    grid = (n, hout // tr)

    ph_spec = pl.BlockSpec((None, hp, wp, cinp), lambda b, r: (b, 0, 0, 0))
    out = pl.pallas_call(
        _make_s2_kernel(),
        out_shape=jax.ShapeDtypeStruct((n, hout * wout, coutp), out_dtype),
        grid=grid,
        in_specs=[ph_spec, ph_spec, ph_spec, ph_spec,
                  pl.BlockSpec(wf.shape, lambda b, r: (0, 0, 0)),
                  pl.BlockSpec(bias.shape, lambda b, r: (0, 0))],
        out_specs=pl.BlockSpec((None, m, coutp), lambda b, r: (b, r, 0)),
        scratch_shapes=[pltpu.VMEM((m, coutp), jnp.float32)],
        compiler_params=pltpu.CompilerParams(
            dimension_semantics=("parallel", "parallel"),
            vmem_limit_bytes=_vmem_limit()),
    )(*phases, wf, bias)
    return out.reshape(n, hout, wout, coutp)


# ------------------------------ block forward -------------------------------- #

def _phase_split2(x_nhwc):
    """Zero-pad H/W by 1 and split into 2x2 (row, column) phases so a stride-2
    3x3 conv only ever needs contiguous slices inside the kernel."""
    xp = jnp.pad(x_nhwc, ((0, 0), (1, 1), (1, 1), (0, 0)))
    return [xp[:, rp::2, cp::2, :] for rp in range(2) for cp in range(2)]


@functools.partial(jax.jit, static_argnames=("stride", "cout"))
def basic_block_forward(x_nchw, params, *, stride, cout):
    """BasicBlock.forward (inference-mode BN). NCHW in / NCHW out."""
    x = jnp.transpose(x_nchw, (0, 2, 3, 1))                 # -> NHWC
    n, h, w, cin = x.shape
    # TODO(synk): odd H/W with stride=2 (ceil-mode output size) not handled.
    assert h % stride == 0 and w % stride == 0
    cinp = params["w1"].shape[1] // 3
    coutp = params["w1"].shape[2]
    hout, wout = h // stride, w // stride

    # Channel-pad to lane width + cast the MXU operand to bf16 (one fused pass).
    x_b = jnp.pad(x.astype(jnp.bfloat16), ((0, 0), (0, 0), (0, 0), (0, cinp - cin)))

    # conv1(stride) + bn1 + relu
    if stride == 1:
        y1 = _conv_s1(x_b, params["w1"], params["b1"], mode="none",
                      out_dtype=jnp.bfloat16)
    else:
        y1 = _conv_s2(_phase_split2(x_b), params["w1"], params["b1"],
                      hout=hout, wout=wout, out_dtype=jnp.bfloat16)

    # conv2 + bn2 + residual + relu (identity add, or fused 1x1 downsample+BN)
    if params["wd"] is not None:
        xs = x_b[:, ::stride, ::stride, :].reshape(n, hout * wout, cinp)
        out = _conv_s1(y1, params["w2"], params["b2"], mode="proj",
                       proj=(xs, params["wd"]), out_dtype=jnp.float32)
    else:
        ident = x_b.reshape(n, h * w, cinp)
        out = _conv_s1(y1, params["w2"], params["b2"], mode="add",
                       identity=ident, out_dtype=jnp.float32)

    out = out[:, :, :, :cout]                               # drop lane padding
    return jnp.transpose(out, (0, 3, 1, 2))                 # -> NCHW


# --------------------------- parameter construction -------------------------- #

def make_raw_params(key, cin, cout, stride):
    ks = jax.random.split(key, 16)

    def bn_params(k0, k1, k2, k3, c):
        gamma = jax.random.uniform(k0, (c,), jnp.float32, 0.5, 1.5)
        beta = jax.random.normal(k1, (c,), jnp.float32) * 0.1
        mean = jax.random.normal(k2, (c,), jnp.float32) * 0.1
        var = jax.random.uniform(k3, (c,), jnp.float32, 0.5, 1.5)
        return (gamma, beta, mean, var)

    raw = {
        "conv1_w": jax.random.normal(ks[0], (cout, cin, 3, 3), jnp.float32) * 0.1,
        "bn1": bn_params(ks[1], ks[2], ks[3], ks[4], cout),
        "conv2_w": jax.random.normal(ks[5], (cout, cout, 3, 3), jnp.float32) * 0.1,
        "bn2": bn_params(ks[6], ks[7], ks[8], ks[9], cout),
    }
    if stride != 1 or cin != cout:
        raw["convd_w"] = jax.random.normal(ks[10], (cout, cin, 1, 1), jnp.float32) * 0.1
        raw["bnd"] = bn_params(ks[11], ks[12], ks[13], ks[14], cout)
    return raw


def fold_params(raw):
    """Fold inference BN into the weights (f32, per output channel) and keep only
    per-channel biases for the kernel epilogue.  Weights are laid out as
    (3 ky, 3*Cin_pad, Cout_pad) fused-K taps, channels padded to the lane width,
    MXU operands cast to bf16 after all f32 folding."""
    cout, cin = raw["conv1_w"].shape[0], raw["conv1_w"].shape[1]
    cinp, coutp = _round_up(cin, LANE), _round_up(cout, LANE)

    def bn_scale_bias(gamma, beta, mean, var):
        s = gamma / jnp.sqrt(var + EPS)
        return s, beta - mean * s

    def fuse3x3(w_oihw, s, ci, cip):
        co = w_oihw.shape[0]
        w = jnp.transpose(w_oihw, (2, 3, 1, 0)) * s            # (3,3,ci,co) * s[co]
        w = jnp.pad(w, ((0, 0), (0, 0), (0, cip - ci), (0, coutp - co)))
        return w.reshape(3, 3 * cip, coutp).astype(jnp.bfloat16)

    def pad_bias(b):
        return jnp.pad(b, (0, coutp - cout)).reshape(1, coutp).astype(jnp.float32)

    s1, b1 = bn_scale_bias(*raw["bn1"])
    s2, b2 = bn_scale_bias(*raw["bn2"])
    p = {"w1": fuse3x3(raw["conv1_w"], s1, cin, cinp), "b1": pad_bias(b1),
         "w2": fuse3x3(raw["conv2_w"], s2, cout, coutp), "b2": pad_bias(b2)}
    if "convd_w" in raw:
        sd, bd = bn_scale_bias(*raw["bnd"])
        wd = jnp.transpose(raw["convd_w"][:, :, 0, 0], (1, 0)) * sd   # (cin,cout)*sd
        p["wd"] = jnp.pad(wd, ((0, cinp - cin), (0, coutp - cout))).astype(jnp.bfloat16)
        p["b2"] = pad_bias(b2 + bd)        # merge downsample-BN bias into conv2 bias
    else:
        p["wd"] = None
    return p


# ------------------------------ pure-JAX reference --------------------------- #

def ref_forward(x, raw, stride):
    def conv(x, w, s, pad):
        return lax.conv_general_dilated(
            x, w, (s, s), [(pad, pad), (pad, pad)],
            dimension_numbers=("NCHW", "OIHW", "NCHW"))

    def bn(x, gbmv):
        g, b, m, v = gbmv
        sh = (1, -1, 1, 1)
        return (x - m.reshape(sh)) / jnp.sqrt(v.reshape(sh) + EPS) * g.reshape(sh) + b.reshape(sh)

    out = jax.nn.relu(bn(conv(x, raw["conv1_w"], stride, 1), raw["bn1"]))
    out = bn(conv(out, raw["conv2_w"], 1, 1), raw["bn2"])
    if "convd_w" in raw:
        identity = bn(conv(x, raw["convd_w"], stride, 0), raw["bnd"])
    else:
        identity = x
    return jax.nn.relu(out + identity)


# ----------------------------------- main ------------------------------------ #

if __name__ == "__main__":
    key = jax.random.PRNGKey(0)
    kx, kp1, kp2 = jax.random.split(key, 3)

    # Case 1: downsampling block (stride=2, channel expansion 4 -> 8)
    N, CIN, COUT, H, W, STRIDE = 2, 4, 8, 16, 16, 2
    x = jax.random.normal(kx, (N, CIN, H, W), jnp.float32)
    raw1 = make_raw_params(kp1, CIN, COUT, STRIDE)
    out1 = jax.block_until_ready(
        basic_block_forward(x, fold_params(raw1), stride=STRIDE, cout=COUT))
    ref1 = ref_forward(x, raw1, STRIDE)
    assert out1.shape == (N, COUT, H // STRIDE, W // STRIDE)
    err1 = float(jnp.max(jnp.abs(out1 - ref1)))
    # bf16 MXU operands (f32 accumulate + f32 epilogue) -> bf16-level tolerance
    assert jnp.allclose(out1, ref1, atol=5e-2, rtol=5e-2), f"stride-2 mismatch {err1}"

    # Case 2: identity block (stride=1, cin == cout -> no downsample)
    raw2 = make_raw_params(kp2, CIN, CIN, 1)
    out2 = jax.block_until_ready(
        basic_block_forward(x, fold_params(raw2), stride=1, cout=CIN))
    ref2 = ref_forward(x, raw2, 1)
    assert out2.shape == (N, CIN, H, W)
    err2 = float(jnp.max(jnp.abs(out2 - ref2)))
    assert jnp.allclose(out2, ref2, atol=5e-2, rtol=5e-2), f"identity mismatch {err2}"

    print("KERNEL_OK")
</pallas_src>

<mosaic_0001>
module attributes {stable_mosaic.version = 11 : i64} {
  func.func @kernel(%arg0: i32, %arg1: i32, %arg2: memref<1x9x9x128xbf16, #tpu.memory_space<vmem>>, %arg3: memref<1x9x9x128xbf16, #tpu.memory_space<vmem>>, %arg4: memref<1x9x9x128xbf16, #tpu.memory_space<vmem>>, %arg5: memref<1x9x9x128xbf16, #tpu.memory_space<vmem>>, %arg6: memref<3x384x128xbf16, #tpu.memory_space<vmem>>, %arg7: memref<1x128xf32, #tpu.memory_space<vmem>>, %arg8: memref<1x64x128xbf16, #tpu.memory_space<vmem>>, %arg9: memref<64x128xf32, #tpu.memory_space<vmem>>) attributes {dimension_semantics = [#tpu.dimension_semantics<parallel>, #tpu.dimension_semantics<parallel>], iteration_bounds = array<i64: 2, 1>, scalar_prefetch = 0 : i64, scratch_operands = 1 : i64, tpu.core_type = #tpu.core_type<tc>, window_params = [{transform_indices = @transform_0, window_bounds = array<i64: 1, 9, 9, 128>}, {transform_indices = @transform_1, window_bounds = array<i64: 1, 9, 9, 128>}, {transform_indices = @transform_2, window_bounds = array<i64: 1, 9, 9, 128>}, {transform_indices = @transform_3, window_bounds = array<i64: 1, 9, 9, 128>}, {pipeline_mode = #tpu.pipeline_mode<synchronous>, transform_indices = @transform_4, window_bounds = array<i64: 3, 384, 128>}, {pipeline_mode = #tpu.pipeline_mode<synchronous>, transform_indices = @transform_5, window_bounds = array<i64: 1, 128>}, {transform_indices = @transform_6, window_bounds = array<i64: 1, 64, 128>}]} {
    %c8_i32 = arith.constant 8 : i32
    %0 = arith.muli %arg1, %c8_i32 : i32
    %c0_i32 = arith.constant 0 : i32
    %1 = arith.addi %0, %c0_i32 : i32
    %c0 = arith.constant 0 : index
    %2 = arith.index_cast %1 : i32 to index
    %c0_0 = arith.constant 0 : index
    %c0_1 = arith.constant 0 : index
    %3 = vector.load %arg2[%c0, %2, %c0_0, %c0_1] : memref<1x9x9x128xbf16, #tpu.memory_space<vmem>>, vector<1x8x9x128xbf16>
    %4 = vector.shape_cast %3 : vector<1x8x9x128xbf16> to vector<8x9x128xbf16>
    %c0_i32_2 = arith.constant 0 : i32
    %5 = arith.addi %0, %c0_i32_2 : i32
    %c0_3 = arith.constant 0 : index
    %6 = arith.index_cast %5 : i32 to index
    %c0_4 = arith.constant 0 : index
    %c0_5 = arith.constant 0 : index
    %7 = vector.load %arg3[%c0_3, %6, %c0_4, %c0_5] : memref<1x9x9x128xbf16, #tpu.memory_space<vmem>>, vector<1x8x9x128xbf16>
    %8 = vector.shape_cast %7 : vector<1x8x9x128xbf16> to vector<8x9x128xbf16>
    %9 = vector.extract_strided_slice %4 {offsets = [0, 0, 0], sizes = [8, 8, 128], strides = [1, 1, 1]} : vector<8x9x128xbf16> to vector<8x8x128xbf16>
    %10 = vector.extract_strided_slice %8 {offsets = [0, 0, 0], sizes = [8, 8, 128], strides = [1, 1, 1]} : vector<8x9x128xbf16> to vector<8x8x128xbf16>
    %11 = vector.extract_strided_slice %4 {offsets = [0, 1, 0], sizes = [8, 8, 128], strides = [1, 1, 1]} : vector<8x9x128xbf16> to vector<8x8x128xbf16>
    %12 = tpu.concatenate %9, %10, %11 in 2 : vector<8x8x128xbf16>, vector<8x8x128xbf16>, vector<8x8x128xbf16> -> vector<8x8x384xbf16>
    %13 = vector.shape_cast %12 : vector<8x8x384xbf16> to vector<64x384xbf16>
    %c0_6 = arith.constant 0 : index
    %c0_7 = arith.constant 0 : index
    %c0_8 = arith.constant 0 : index
    %14 = vector.load %arg6[%c0_6, %c0_7, %c0_8] : memref<3x384x128xbf16, #tpu.memory_space<vmem>>, vector<1x384x128xbf16>
    %15 = vector.shape_cast %14 : vector<1x384x128xbf16> to vector<384x128xbf16>
    %cst = arith.constant dense<0.000000e+00> : vector<64x128xf32>
    %16 = tpu.matmul %13, %15, %cst {dimension_numbers = #tpu.dot_dimension_numbers<[1], [0], [0], [1], [0, 0, 1, 1], [], []>} : vector<64x384xbf16>, vector<384x128xbf16>, vector<64x128xf32> -> vector<64x128xf32>
    %c0_9 = arith.constant 0 : index
    %c0_10 = arith.constant 0 : index
    %17 = vector.load %arg9[%c0_9, %c0_10] : memref<64x128xf32, #tpu.memory_space<vmem>>, vector<64x128xf32>
    tpu.vector_store %arg9[%c0_9, %c0_10], %16 {strides = array<i32>} : memref<64x128xf32, #tpu.memory_space<vmem>>, vector<64x128xf32>,
    %c0_i32_11 = arith.constant 0 : i32
    %18 = arith.addi %0, %c0_i32_11 : i32
    %c0_12 = arith.constant 0 : index
    %19 = arith.index_cast %18 : i32 to index
    %c0_13 = arith.constant 0 : index
    %c0_14 = arith.constant 0 : index
    %20 = vector.load %arg4[%c0_12, %19, %c0_13, %c0_14] : memref<1x9x9x128xbf16, #tpu.memory_space<vmem>>, vector<1x8x9x128xbf16>
    %21 = vector.shape_cast %20 : vector<1x8x9x128xbf16> to vector<8x9x128xbf16>
    %c0_i32_15 = arith.constant 0 : i32
    %22 = arith.addi %0, %c0_i32_15 : i32
    %c0_16 = arith.constant 0 : index
    %23 = arith.index_cast %22 : i32 to index
    %c0_17 = arith.constant 0 : index
    %c0_18 = arith.constant 0 : index
    %24 = vector.load %arg5[%c0_16, %23, %c0_17, %c0_18] : memref<1x9x9x128xbf16, #tpu.memory_space<vmem>>, vector<1x8x9x128xbf16>
    %25 = vector.shape_cast %24 : vector<1x8x9x128xbf16> to vector<8x9x128xbf16>
    %26 = vector.extract_strided_slice %21 {offsets = [0, 0, 0], sizes = [8, 8, 128], strides = [1, 1, 1]} : vector<8x9x128xbf16> to vector<8x8x128xbf16>
    %27 = vector.extract_strided_slice %25 {offsets = [0, 0, 0], sizes = [8, 8, 128], strides = [1, 1, 1]} : vector<8x9x128xbf16> to vector<8x8x128xbf16>
    %28 = vector.extract_strided_slice %21 {offsets = [0, 1, 0], sizes = [8, 8, 128], strides = [1, 1, 1]} : vector<8x9x128xbf16> to vector<8x8x128xbf16>
    %29 = tpu.concatenate %26, %27, %28 in 2 : vector<8x8x128xbf16>, vector<8x8x128xbf16>, vector<8x8x128xbf16> -> vector<8x8x384xbf16>
    %30 = vector.shape_cast %29 : vector<8x8x384xbf16> to vector<64x384xbf16>
    %c1 = arith.constant 1 : index
    %c0_19 = arith.constant 0 : index
    %c0_20 = arith.constant 0 : index
    %31 = vector.load %arg6[%c1, %c0_19, %c0_20] : memref<3x384x128xbf16, #tpu.memory_space<vmem>>, vector<1x384x128xbf16>
    %32 = vector.shape_cast %31 : vector<1x384x128xbf16> to vector<384x128xbf16>
    %cst_21 = arith.constant dense<0.000000e+00> : vector<64x128xf32>
    %33 = tpu.matmul %30, %32, %cst_21 {dimension_numbers = #tpu.dot_dimension_numbers<[1], [0], [0], [1], [0, 0, 1, 1], [], []>} : vector<64x384xbf16>, vector<384x128xbf16>, vector<64x128xf32> -> vector<64x128xf32>
    %c0_22 = arith.constant 0 : index
    %c0_23 = arith.constant 0 : index
    %34 = vector.load %arg9[%c0_22, %c0_23] : memref<64x128xf32, #tpu.memory_space<vmem>>, vector<64x128xf32>
    %35 = arith.addf %34, %33 : vector<64x128xf32>
    %c0_24 = arith.constant 0 : index
    %c0_25 = arith.constant 0 : index
    %36 = vector.load %arg9[%c0_24, %c0_25] : memref<64x128xf32, #tpu.memory_space<vmem>>, vector<64x128xf32>
    tpu.vector_store %arg9[%c0_24, %c0_25], %35 {strides = array<i32>} : memref<64x128xf32, #tpu.memory_space<vmem>>, vector<64x128xf32>,
    %c1_i32 = arith.constant 1 : i32
    %37 = arith.addi %0, %c1_i32 : i32
    %c0_26 = arith.constant 0 : index
    %38 = arith.index_cast %37 : i32 to index
    %c0_27 = arith.constant 0 : index
    %c0_28 = arith.constant 0 : index
    %39 = vector.load %arg2[%c0_26, %38, %c0_27, %c0_28] : memref<1x9x9x128xbf16, #tpu.memory_space<vmem>>, vector<1x8x9x128xbf16>
    %40 = vector.shape_cast %39 : vector<1x8x9x128xbf16> to vector<8x9x128xbf16>
    %c1_i32_29 = arith.constant 1 : i32
    %41 = arith.addi %0, %c1_i32_29 : i32
    %c0_30 = arith.constant 0 : index
    %42 = arith.index_cast %41 : i32 to index
    %c0_31 = arith.constant 0 : index
    %c0_32 = arith.constant 0 : index
    %43 = vector.load %arg3[%c0_30, %42, %c0_31, %c0_32] : memref<1x9x9x128xbf16, #tpu.memory_space<vmem>>, vector<1x8x9x128xbf16>
    %44 = vector.shape_cast %43 : vector<1x8x9x128xbf16> to vector<8x9x128xbf16>
    %45 = vector.extract_strided_slice %40 {offsets = [0, 0, 0], sizes = [8, 8, 128], strides = [1, 1, 1]} : vector<8x9x128xbf16> to vector<8x8x128xbf16>
    %46 = vector.extract_strided_slice %44 {offsets = [0, 0, 0], sizes = [8, 8, 128], strides = [1, 1, 1]} : vector<8x9x128xbf16> to vector<8x8x128xbf16>
    %47 = vector.extract_strided_slice %40 {offsets = [0, 1, 0], sizes = [8, 8, 128], strides = [1, 1, 1]} : vector<8x9x128xbf16> to vector<8x8x128xbf16>
    %48 = tpu.concatenate %45, %46, %47 in 2 : vector<8x8x128xbf16>, vector<8x8x128xbf16>, vector<8x8x128xbf16> -> vector<8x8x384xbf16>
    %49 = vector.shape_cast %48 : vector<8x8x384xbf16> to vector<64x384xbf16>
    %c2 = arith.constant 2 : index
    %c0_33 = arith.constant 0 : index
    %c0_34 = arith.constant 0 : index
    %50 = vector.load %arg6[%c2, %c0_33, %c0_34] : memref<3x384x128xbf16, #tpu.memory_space<vmem>>, vector<1x384x128xbf16>
    %51 = vector.shape_cast %50 : vector<1x384x128xbf16> to vector<384x128xbf16>
    %cst_35 = arith.constant dense<0.000000e+00> : vector<64x128xf32>
    %52 = tpu.matmul %49, %51, %cst_35 {dimension_numbers = #tpu.dot_dimension_numbers<[1], [0], [0], [1], [0, 0, 1, 1], [], []>} : vector<64x384xbf16>, vector<384x128xbf16>, vector<64x128xf32> -> vector<64x128xf32>
    %c0_36 = arith.constant 0 : index
    %c0_37 = arith.constant 0 : index
    %53 = vector.load %arg9[%c0_36, %c0_37] : memref<64x128xf32, #tpu.memory_space<vmem>>, vector<64x128xf32>
    %54 = arith.addf %53, %52 : vector<64x128xf32>
    %c0_38 = arith.constant 0 : index
    %c0_39 = arith.constant 0 : index
    %55 = vector.load %arg9[%c0_38, %c0_39] : memref<64x128xf32, #tpu.memory_space<vmem>>, vector<64x128xf32>
    tpu.vector_store %arg9[%c0_38, %c0_39], %54 {strides = array<i32>} : memref<64x128xf32, #tpu.memory_space<vmem>>, vector<64x128xf32>,
    %c0_40 = arith.constant 0 : index
    %c0_41 = arith.constant 0 : index
    %56 = vector.load %arg9[%c0_40, %c0_41] : memref<64x128xf32, #tpu.memory_space<vmem>>, vector<64x128xf32>
    %c0_42 = arith.constant 0 : index
    %c0_43 = arith.constant 0 : index
    %57 = vector.load %arg7[%c0_42, %c0_43] : memref<1x128xf32, #tpu.memory_space<vmem>>, vector<1x128xf32>
    %58 = vector.broadcast %57 : vector<1x128xf32> to vector<64x128xf32>
    %59 = arith.addf %56, %58 : vector<64x128xf32>
    %cst_44 = arith.constant 0.000000e+00 : f32
    %60 = vector.broadcast %cst_44 : f32 to vector<64x128xf32>
    %61 = arith.maximumf %59, %60 : vector<64x128xf32>
    %62 = arith.truncf %61 : vector<64x128xf32> to vector<64x128xbf16>
    %c0_45 = arith.constant 0 : index
    %c0_46 = arith.constant 0 : index
    %c0_47 = arith.constant 0 : index
    %63 = vector.load %arg8[%c0_45, %c0_46, %c0_47] : memref<1x64x128xbf16, #tpu.memory_space<vmem>>, vector<1x64x128xbf16>
    %64 = vector.shape_cast %63 : vector<1x64x128xbf16> to vector<64x128xbf16>
    %65 = vector.shape_cast %62 : vector<64x128xbf16> to vector<1x64x128xbf16>
    tpu.vector_store %arg8[%c0_45, %c0_46, %c0_47], %65 {strides = array<i32>} : memref<1x64x128xbf16, #tpu.memory_space<vmem>>, vector<1x64x128xbf16>,
    return
  }
  func.func @transform_0(%arg0: i32, %arg1: i32) -> (i32, i32, i32, i32) {
    %c0_i32 = arith.constant 0 : i32
    %c0_i32_0 = arith.constant 0 : i32
    %c0_i32_1 = arith.constant 0 : i32
    %c0_i32_2 = arith.constant 0 : i32
    return %arg0, %c0_i32, %c0_i32_0, %c0_i32_1 : i32, i32, i32, i32
  }
  func.func @transform_1(%arg0: i32, %arg1: i32) -> (i32, i32, i32, i32) {
    %c0_i32 = arith.constant 0 : i32
    %c0_i32_0 = arith.constant 0 : i32
    %c0_i32_1 = arith.constant 0 : i32
    %c0_i32_2 = arith.constant 0 : i32
    return %arg0, %c0_i32, %c0_i32_0, %c0_i32_1 : i32, i32, i32, i32
  }
  func.func @transform_2(%arg0: i32, %arg1: i32) -> (i32, i32, i32, i32) {
    %c0_i32 = arith.constant 0 : i32
    %c0_i32_0 = arith.constant 0 : i32
    %c0_i32_1 = arith.constant 0 : i32
    %c0_i32_2 = arith.constant 0 : i32
    return %arg0, %c0_i32, %c0_i32_0, %c0_i32_1 : i32, i32, i32, i32
  }
  func.func @transform_3(%arg0: i32, %arg1: i32) -> (i32, i32, i32, i32) {
    %c0_i32 = arith.constant 0 : i32
    %c0_i32_0 = arith.constant 0 : i32
    %c0_i32_1 = arith.constant 0 : i32
    %c0_i32_2 = arith.constant 0 : i32
    return %arg0, %c0_i32, %c0_i32_0, %c0_i32_1 : i32, i32, i32, i32
  }
  func.func @transform_4(%arg0: i32, %arg1: i32) -> (i32, i32, i32) {
    %c0_i32 = arith.constant 0 : i32
    %c0_i32_0 = arith.constant 0 : i32
    %c0_i32_1 = arith.constant 0 : i32
    %c0_i32_2 = arith.constant 0 : i32
    return %c0_i32, %c0_i32_0, %c0_i32_1 : i32, i32, i32
  }
  func.func @transform_5(%arg0: i32, %arg1: i32) -> (i32, i32) {
    %c0_i32 = arith.constant 0 : i32
    %c0_i32_0 = arith.constant 0 : i32
    %c0_i32_1 = arith.constant 0 : i32
    return %c0_i32, %c0_i32_0 : i32, i32
  }
  func.func @transform_6(%arg0: i32, %arg1: i32) -> (i32, i32, i32) {
    %c0_i32 = arith.constant 0 : i32
    %c0_i32_0 = arith.constant 0 : i32
    return %arg0, %arg1, %c0_i32 : i32, i32, i32
  }
}

module attributes {stable_mosaic.version = 11 : i64} {
  func.func @kernel(%arg0: i32, %arg1: i32, %arg2: memref<1x8x8x128xbf16, #tpu.memory_space<vmem>>, %arg3: memref<3x384x128xbf16, #tpu.memory_space<vmem>>, %arg4: memref<1x128xf32, #tpu.memory_space<vmem>>, %arg5: memref<1x64x128xbf16, #tpu.memory_space<vmem>>, %arg6: memref<128x128xbf16, #tpu.memory_space<vmem>>, %arg7: memref<1x64x128xf32, #tpu.memory_space<vmem>>, %arg8: memref<64x128xf32, #tpu.memory_space<vmem>>, %arg9: memref<10x10x128xbf16, #tpu.memory_space<vmem>>) attributes {dimension_semantics = [#tpu.dimension_semantics<parallel>, #tpu.dimension_semantics<arbitrary>], iteration_bounds = array<i64: 2, 1>, scalar_prefetch = 0 : i64, scratch_operands = 2 : i64, tpu.core_type = #tpu.core_type<tc>, window_params = [{transform_indices = @transform_0, window_bounds = array<i64: 1, 8, 8, 128>}, {pipeline_mode = #tpu.pipeline_mode<synchronous>, transform_indices = @transform_1, window_bounds = array<i64: 3, 384, 128>}, {pipeline_mode = #tpu.pipeline_mode<synchronous>, transform_indices = @transform_2, window_bounds = array<i64: 1, 128>}, {transform_indices = @transform_3, window_bounds = array<i64: 1, 64, 128>}, {pipeline_mode = #tpu.pipeline_mode<synchronous>, transform_indices = @transform_4, window_bounds = array<i64: 128, 128>}, {transform_indices = @transform_5, window_bounds = array<i64: 1, 64, 128>}]} {
    %c8_i32 = arith.constant 8 : i32
    %0 = arith.muli %arg1, %c8_i32 : i32
    %c0_i32 = arith.constant 0 : i32
    %1 = arith.cmpi eq, %arg1, %c0_i32 : i32
    %2 = arith.extui %1 : i1 to i32
    %c0_i32_0 = arith.constant 0 : i32
    %3 = arith.cmpi ne, %2, %c0_i32_0 : i32
    scf.if %3 {
      %cst_40 = arith.constant 0.000000e+00 : bf16
      %58 = vector.broadcast %cst_40 : bf16 to vector<8x1x128xbf16>
      %cst_41 = arith.constant 0.000000e+00 : bf16
      %59 = vector.broadcast %cst_41 : bf16 to vector<1x10x128xbf16>
      %c0_42 = arith.constant 0 : index
      %c0_43 = arith.constant 0 : index
      %c0_44 = arith.constant 0 : index
      %c0_45 = arith.constant 0 : index
      %60 = vector.load %arg2[%c0_42, %c0_43, %c0_44, %c0_45] : memref<1x8x8x128xbf16, #tpu.memory_space<vmem>>, vector<1x8x8x128xbf16>
      %61 = vector.shape_cast %60 : vector<1x8x8x128xbf16> to vector<8x8x128xbf16>
      %62 = tpu.concatenate %58, %61, %58 in 1 : vector<8x1x128xbf16>, vector<8x8x128xbf16>, vector<8x1x128xbf16> -> vector<8x10x128xbf16>
      %63 = tpu.concatenate %59, %62, %59 in 0 : vector<1x10x128xbf16>, vector<8x10x128xbf16>, vector<1x10x128xbf16> -> vector<10x10x128xbf16>
      %c0_46 = arith.constant 0 : index
      %c0_47 = arith.constant 0 : index
      %c0_48 = arith.constant 0 : index
      %64 = vector.load %arg9[%c0_46, %c0_47, %c0_48] : memref<10x10x128xbf16, #tpu.memory_space<vmem>>, vector<10x10x128xbf16>
      tpu.vector_store %arg9[%c0_46, %c0_47, %c0_48], %63 {strides = array<i32>} : memref<10x10x128xbf16, #tpu.memory_space<vmem>>, vector<10x10x128xbf16>,
    } else {
    }
    %c0_i32_1 = arith.constant 0 : i32
    %4 = arith.addi %0, %c0_i32_1 : i32
    %5 = arith.index_cast %4 : i32 to index
    %c0 = arith.constant 0 : index
    %c0_2 = arith.constant 0 : index
    %6 = vector.load %arg9[%5, %c0, %c0_2] : memref<10x10x128xbf16, #tpu.memory_space<vmem>>, vector<8x10x128xbf16>
    %7 = vector.extract_strided_slice %6 {offsets = [0, 0, 0], sizes = [8, 8, 128], strides = [1, 1, 1]} : vector<8x10x128xbf16> to vector<8x8x128xbf16>
    %8 = vector.extract_strided_slice %6 {offsets = [0, 1, 0], sizes = [8, 8, 128], strides = [1, 1, 1]} : vector<8x10x128xbf16> to vector<8x8x128xbf16>
    %9 = vector.extract_strided_slice %6 {offsets = [0, 2, 0], sizes = [8, 8, 128], strides = [1, 1, 1]} : vector<8x10x128xbf16> to vector<8x8x128xbf16>
    %10 = tpu.concatenate %7, %8, %9 in 2 : vector<8x8x128xbf16>, vector<8x8x128xbf16>, vector<8x8x128xbf16> -> vector<8x8x384xbf16>
    %11 = vector.shape_cast %10 : vector<8x8x384xbf16> to vector<64x384xbf16>
    %c0_3 = arith.constant 0 : index
    %c0_4 = arith.constant 0 : index
    %c0_5 = arith.constant 0 : index
    %12 = vector.load %arg3[%c0_3, %c0_4, %c0_5] : memref<3x384x128xbf16, #tpu.memory_space<vmem>>, vector<1x384x128xbf16>
    %13 = vector.shape_cast %12 : vector<1x384x128xbf16> to vector<384x128xbf16>
    %cst = arith.constant dense<0.000000e+00> : vector<64x128xf32>
    %14 = tpu.matmul %11, %13, %cst {dimension_numbers = #tpu.dot_dimension_numbers<[1], [0], [0], [1], [0, 0, 1, 1], [], []>} : vector<64x384xbf16>, vector<384x128xbf16>, vector<64x128xf32> -> vector<64x128xf32>
    %c0_6 = arith.constant 0 : index
    %c0_7 = arith.constant 0 : index
    %15 = vector.load %arg8[%c0_6, %c0_7] : memref<64x128xf32, #tpu.memory_space<vmem>>, vector<64x128xf32>
    tpu.vector_store %arg8[%c0_6, %c0_7], %14 {strides = array<i32>} : memref<64x128xf32, #tpu.memory_space<vmem>>, vector<64x128xf32>,
    %c1_i32 = arith.constant 1 : i32
    %16 = arith.addi %0, %c1_i32 : i32
    %17 = arith.index_cast %16 : i32 to index
    %c0_8 = arith.constant 0 : index
    %c0_9 = arith.constant 0 : index
    %18 = vector.load %arg9[%17, %c0_8, %c0_9] : memref<10x10x128xbf16, #tpu.memory_space<vmem>>, vector<8x10x128xbf16>
    %19 = vector.extract_strided_slice %18 {offsets = [0, 0, 0], sizes = [8, 8, 128], strides = [1, 1, 1]} : vector<8x10x128xbf16> to vector<8x8x128xbf16>
    %20 = vector.extract_strided_slice %18 {offsets = [0, 1, 0], sizes = [8, 8, 128], strides = [1, 1, 1]} : vector<8x10x128xbf16> to vector<8x8x128xbf16>
    %21 = vector.extract_strided_slice %18 {offsets = [0, 2, 0], sizes = [8, 8, 128], strides = [1, 1, 1]} : vector<8x10x128xbf16> to vector<8x8x128xbf16>
    %22 = tpu.concatenate %19, %20, %21 in 2 : vector<8x8x128xbf16>, vector<8x8x128xbf16>, vector<8x8x128xbf16> -> vector<8x8x384xbf16>
    %23 = vector.shape_cast %22 : vector<8x8x384xbf16> to vector<64x384xbf16>
    %c1 = arith.constant 1 : index
    %c0_10 = arith.constant 0 : index
    %c0_11 = arith.constant 0 : index
    %24 = vector.load %arg3[%c1, %c0_10, %c0_11] : memref<3x384x128xbf16, #tpu.memory_space<vmem>>, vector<1x384x128xbf16>
    %25 = vector.shape_cast %24 : vector<1x384x128xbf16> to vector<384x128xbf16>
    %cst_12 = arith.constant dense<0.000000e+00> : vector<64x128xf32>
    %26 = tpu.matmul %23, %25, %cst_12 {dimension_numbers = #tpu.dot_dimension_numbers<[1], [0], [0], [1], [0, 0, 1, 1], [], []>} : vector<64x384xbf16>, vector<384x128xbf16>, vector<64x128xf32> -> vector<64x128xf32>
    %c0_13 = arith.constant 0 : index
    %c0_14 = arith.constant 0 : index
    %27 = vector.load %arg8[%c0_13, %c0_14] : memref<64x128xf32, #tpu.memory_space<vmem>>, vector<64x128xf32>
    %28 = arith.addf %27, %26 : vector<64x128xf32>
    %c0_15 = arith.constant 0 : index
    %c0_16 = arith.constant 0 : index
    %29 = vector.load %arg8[%c0_15, %c0_16] : memref<64x128xf32, #tpu.memory_space<vmem>>, vector<64x128xf32>
    tpu.vector_store %arg8[%c0_15, %c0_16], %28 {strides = array<i32>} : memref<64x128xf32, #tpu.memory_space<vmem>>, vector<64x128xf32>,
    %c2_i32 = arith.constant 2 : i32
    %30 = arith.addi %0, %c2_i32 : i32
    %31 = arith.index_cast %30 : i32 to index
    %c0_17 = arith.constant 0 : index
    %c0_18 = arith.constant 0 : index
    %32 = vector.load %arg9[%31, %c0_17, %c0_18] : memref<10x10x128xbf16, #tpu.memory_space<vmem>>, vector<8x10x128xbf16>
    %33 = vector.extract_strided_slice %32 {offsets = [0, 0, 0], sizes = [8, 8, 128], strides = [1, 1, 1]} : vector<8x10x128xbf16> to vector<8x8x128xbf16>
    %34 = vector.extract_strided_slice %32 {offsets = [0, 1, 0], sizes = [8, 8, 128], strides = [1, 1, 1]} : vector<8x10x128xbf16> to vector<8x8x128xbf16>
    %35 = vector.extract_strided_slice %32 {offsets = [0, 2, 0], sizes = [8, 8, 128], strides = [1, 1, 1]} : vector<8x10x128xbf16> to vector<8x8x128xbf16>
    %36 = tpu.concatenate %33, %34, %35 in 2 : vector<8x8x128xbf16>, vector<8x8x128xbf16>, vector<8x8x128xbf16> -> vector<8x8x384xbf16>
    %37 = vector.shape_cast %36 : vector<8x8x384xbf16> to vector<64x384xbf16>
    %c2 = arith.constant 2 : index
    %c0_19 = arith.constant 0 : index
    %c0_20 = arith.constant 0 : index
    %38 = vector.load %arg3[%c2, %c0_19, %c0_20] : memref<3x384x128xbf16, #tpu.memory_space<vmem>>, vector<1x384x128xbf16>
    %39 = vector.shape_cast %38 : vector<1x384x128xbf16> to vector<384x128xbf16>
    %cst_21 = arith.constant dense<0.000000e+00> : vector<64x128xf32>
    %40 = tpu.matmul %37, %39, %cst_21 {dimension_numbers = #tpu.dot_dimension_numbers<[1], [0], [0], [1], [0, 0, 1, 1], [], []>} : vector<64x384xbf16>, vector<384x128xbf16>, vector<64x128xf32> -> vector<64x128xf32>
    %c0_22 = arith.constant 0 : index
    %c0_23 = arith.constant 0 : index
    %41 = vector.load %arg8[%c0_22, %c0_23] : memref<64x128xf32, #tpu.memory_space<vmem>>, vector<64x128xf32>
    %42 = arith.addf %41, %40 : vector<64x128xf32>
    %c0_24 = arith.constant 0 : index
    %c0_25 = arith.constant 0 : index
    %43 = vector.load %arg8[%c0_24, %c0_25] : memref<64x128xf32, #tpu.memory_space<vmem>>, vector<64x128xf32>
    tpu.vector_store %arg8[%c0_24, %c0_25], %42 {strides = array<i32>} : memref<64x128xf32, #tpu.memory_space<vmem>>, vector<64x128xf32>,
    %c0_26 = arith.constant 0 : index
    %c0_27 = arith.constant 0 : index
    %44 = vector.load %arg8[%c0_26, %c0_27] : memref<64x128xf32, #tpu.memory_space<vmem>>, vector<64x128xf32>
    %c0_28 = arith.constant 0 : index
    %c0_29 = arith.constant 0 : index
    %45 = vector.load %arg4[%c0_28, %c0_29] : memref<1x128xf32, #tpu.memory_space<vmem>>, vector<1x128xf32>
    %46 = vector.broadcast %45 : vector<1x128xf32> to vector<64x128xf32>
    %47 = arith.addf %44, %46 : vector<64x128xf32>
    %c0_30 = arith.constant 0 : index
    %c0_31 = arith.constant 0 : index
    %c0_32 = arith.constant 0 : index
    %48 = vector.load %arg5[%c0_30, %c0_31, %c0_32] : memref<1x64x128xbf16, #tpu.memory_space<vmem>>, vector<1x64x128xbf16>
    %49 = vector.shape_cast %48 : vector<1x64x128xbf16> to vector<64x128xbf16>
    %c0_33 = arith.constant 0 : index
    %c0_34 = arith.constant 0 : index
    %50 = vector.load %arg6[%c0_33, %c0_34] : memref<128x128xbf16, #tpu.memory_space<vmem>>, vector<128x128xbf16>
    %cst_35 = arith.constant dense<0.000000e+00> : vector<64x128xf32>
    %51 = tpu.matmul %49, %50, %cst_35 {dimension_numbers = #tpu.dot_dimension_numbers<[1], [0], [0], [1], [0, 0, 1, 1], [], []>} : vector<64x128xbf16>, vector<128x128xbf16>, vector<64x128xf32> -> vector<64x128xf32>
    %52 = arith.addf %47, %51 : vector<64x128xf32>
    %cst_36 = arith.constant 0.000000e+00 : f32
    %53 = vector.broadcast %cst_36 : f32 to vector<64x128xf32>
    %54 = arith.maximumf %52, %53 : vector<64x128xf32>
    %c0_37 = arith.constant 0 : index
    %c0_38 = arith.constant 0 : index
    %c0_39 = arith.constant 0 : index
    %55 = vector.load %arg7[%c0_37, %c0_38, %c0_39] : memref<1x64x128xf32, #tpu.memory_space<vmem>>, vector<1x64x128xf32>
    %56 = vector.shape_cast %55 : vector<1x64x128xf32> to vector<64x128xf32>
    %57 = vector.shape_cast %54 : vector<64x128xf32> to vector<1x64x128xf32>
    tpu.vector_store %arg7[%c0_37, %c0_38, %c0_39], %57 {strides = array<i32>} : memref<1x64x128xf32, #tpu.memory_space<vmem>>, vector<1x64x128xf32>,
    return
  }
  func.func @transform_0(%arg0: i32, %arg1: i32) -> (i32, i32, i32, i32) {
    %c0_i32 = arith.constant 0 : i32
    %c0_i32_0 = arith.constant 0 : i32
    %c0_i32_1 = arith.constant 0 : i32
    %c0_i32_2 = arith.constant 0 : i32
    return %arg0, %c0_i32, %c0_i32_0, %c0_i32_1 : i32, i32, i32, i32
  }
  func.func @transform_1(%arg0: i32, %arg1: i32) -> (i32, i32, i32) {
    %c0_i32 = arith.constant 0 : i32
    %c0_i32_0 = arith.constant 0 : i32
    %c0_i32_1 = arith.constant 0 : i32
    %c0_i32_2 = arith.constant 0 : i32
    return %c0_i32, %c0_i32_0, %c0_i32_1 : i32, i32, i32
  }
  func.func @transform_2(%arg0: i32, %arg1: i32) -> (i32, i32) {
    %c0_i32 = arith.constant 0 : i32
    %c0_i32_0 = arith.constant 0 : i32
    %c0_i32_1 = arith.constant 0 : i32
    return %c0_i32, %c0_i32_0 : i32, i32
  }
  func.func @transform_3(%arg0: i32, %arg1: i32) -> (i32, i32, i32) {
    %c0_i32 = arith.constant 0 : i32
    %c0_i32_0 = arith.constant 0 : i32
    return %arg0, %arg1, %c0_i32 : i32, i32, i32
  }
  func.func @transform_4(%arg0: i32, %arg1: i32) -> (i32, i32) {
    %c0_i32 = arith.constant 0 : i32
    %c0_i32_0 = arith.constant 0 : i32
    %c0_i32_1 = arith.constant 0 : i32
    return %c0_i32, %c0_i32_0 : i32, i32
  }
  func.func @transform_5(%arg0: i32, %arg1: i32) -> (i32, i32, i32) {
    %c0_i32 = arith.constant 0 : i32
    %c0_i32_0 = arith.constant 0 : i32
    return %arg0, %arg1, %c0_i32 : i32, i32, i32
  }
}

</mosaic_0001>

<bundles_post_ra>
// kernel: basic_block_forward.2
= control target key start
LH: loop header
LB: loop body
LE: loop exit
PB: predicated region body
PF: predicated region fallthrough
CT: control target
= control target key end

     0   :  { %s2605_s21 = smov 0   ;;  %s2607_s22 = smov 0   ;;  %s3170_s0 = inlined_call_operand.vmem [shape: bf16[2,9,9,128], index: 0, kind: input, shape index: {}]   ;;  %s3171_s1 = inlined_call_operand.vmem [shape: bf16[2,9,9,128], index: 1, kind: input, shape index: {}]   ;;  %s3172_s2 = inlined_call_operand.vmem [shape: bf16[2,9,9,128], index: 2, kind: input, shape index: {}]   ;;  %s3173_s3 = inlined_call_operand.vmem [shape: bf16[2,9,9,128], index: 3, kind: input, shape index: {}]   ;;  %s3174_s4 = inlined_call_operand.vmem [shape: bf16[3,384,128], index: 4, kind: input, shape index: {}]   ;;  %s3175_s5 = inlined_call_operand.vmem [shape: f32[1,128], index: 5, kind: input, shape index: {}]   ;;  %s3176_s6 = inlined_call_operand.vmem [shape: bf16[2,64,128], index: 6, kind: output, shape index: {}]  }
   0x1   :  { %s2609_s23 = smov 0  }
   0x2 LB: > { %s28_s24 = sadd.s32 1, %s2564_s22  ;;  %p1931_p0 = scmp.ge.s32.totalorder %s2568_s23, 1  ;;  %s2568_s23 = sphi %s2609_s23, %s16_s23   ;;  %s2564_s22 = sphi %s2607_s22, %s3178_s22   ;;  %s2560_s21 = sphi %s2605_s21, %s3177_s21  }
   0x3   : > { %p30_p1 = scmp.ge.s32.totalorder %s28_s24, 2  ;;  %p256_p2 = scmp.lt.s32.totalorder %s2568_s23, 3 }
   0x5   : > { %s3180_s24 = smov (%p30_p1, %s28_s24), 0  ;;  %p257_p3 = pnand %p1931_p0, %p256_p2 }
   0x6   : > { %p305_p4 = scmp.lt.s32.totalorder (!%p257_p3), %s2560_s21, 1 }
   0x7   : > { %260 = sbr.rel (%p257_p3) target bundleno = 336 (0x150), region = 44 }
   0xc   : > { %v2408_v0 = vld [vmem:[%s3174_s4 + $0x38] sm:$0xff]  ;;  %v2407_v3 = vld [vmem:[%s3174_s4 + $0x30] sm:$0xff]  ;;  %s3182_s21 = smov (!%p305_p4, %s2560_s21), 1  ;;  %v2406_v6 = vld [vmem:[%s3174_s4 + $0x28] sm:$0xff] }
   0xd   : > { %v2424_v1 = vld [vmem:[%s3174_s4 + $0xb8] sm:$0xff]  ;;  %701 = vmatpush.bf16.msra.mxu0 %v2408_v0  ;;  %2504 = vmatpush.bf16.msra.mxu1 %v2408_v0  ;;  %v2423_v4 = vld [vmem:[%s3174_s4 + $0xb0] sm:$0xff]  ;;  %s2644_s13 = smul.u32 72, %s3182_s21  ;;  %v2422_v7 = vld [vmem:[%s3174_s4 + $0xa8] sm:$0xff] }
   0xe   : > { %v2436_v2 = vld [vmem:[%s3174_s4 + $0xf8] sm:$0xff]  ;;  %759 = vmatpush.bf16.msra.mxu2 %v2424_v1  ;;  %v2435_v5 = vld [vmem:[%s3174_s4 + $0xf0] sm:$0xff]  ;;  %v2434_v8 = vld [vmem:[%s3174_s4 + $0xe8] sm:$0xff] }
   0xf   : > { %1161 = vmatpush.bf16.msra.mxu3 %v2436_v2  ;;  %s2653_s18 = scalar_lea.vmem %s3170_s0, %s2644_s13  ;;  %s2674_s29 = scalar_lea.vmem %s3172_s2, %s2644_s13  ;;  %v2405_v17 = vld [vmem:[%s3174_s4 + $0x20] sm:$0xff]  ;;  %v2404_v28 = vld [vmem:[%s3174_s4 + $0x18] sm:$0xff]  ;;  %v2403_v37 = vld [vmem:[%s3174_s4 + $0x10] sm:$0xff] }
  0x10   : > { %v2662_v9 = vld [vmem:[%s2653_s18] sm:$0xf]  ;;  %v340_v10 = vld [vmem:[%s2653_s18 + $0x4] sm:$0x1]  ;;  %v2666_v11 = vld [vmem:[%s2653_s18 + $0x8] sm:$0xf]  ;;  %s2928_s19 = scalar_lea.vmem %s3171_s1, %s2644_s13  ;;  %s2948_s7 = scalar_lea.vmem %s3173_s3, %s2644_s13 }
  0x11   : > { %702 = vmatpush.bf16.msra.mxu0 %v2407_v3  ;;  %2505 = vmatpush.bf16.msra.mxu1 %v2407_v3  ;;  %v342_v12 = vld [vmem:[%s2653_s18 + $0xc] sm:$0x1]  ;;  %v381_v13 = vunpack.c.l.b16 %v2662_v9  ;;  %v382_v14 = vunpack.c.l.b16 %v340_v10  ;;  %v383_v15 = vunpack.c.l.b16 %v2666_v11  ;;  %v2421_v18 = vld [vmem:[%s3174_s4 + $0xa0] sm:$0xff]  ;;  %v2695_v24 = vld [vmem:[%s2674_s29 + $0x8] sm:$0xf] }
  0x12   : > { %760 = vmatpush.bf16.msra.mxu2 %v2423_v4  ;;  %v384_v16 = vunpack.c.l.b16 %v342_v12  ;;  %v2433_v19 = vld [vmem:[%s3174_s4 + $0xe0] sm:$0xff]  ;;  %v801_v25 = vld [vmem:[%s2674_s29 + $0xc] sm:$0x1]  ;;  %v842_v31 = vunpack.c.l.b16 %v2695_v24  ;;  %v2420_v33 = vld [vmem:[%s3174_s4 + $0x98] sm:$0xff] }
  0x13   : > { %1162 = vmatpush.bf16.msra.mxu3 %v2435_v5  ;;  %v397_v20 = vpack.c.b16 %v382_v14, %v381_v13  ;;  %v2691_v22 = vld [vmem:[%s2674_s29] sm:$0xf]  ;;  %v799_v23 = vld [vmem:[%s2674_s29 + $0x4] sm:$0x1]  ;;  %v843_v32 = vunpack.c.l.b16 %v801_v25  ;;  %v2432_v34 = vld [vmem:[%s3174_s4 + $0xd8] sm:$0xff] }
  0x14   : > { %v398_v21 = vpack.c.b16 %v384_v16, %v383_v15  ;;  %v840_v27 = vunpack.c.l.b16 %v2691_v22  ;;  %v841_v30 = vunpack.c.l.b16 %v799_v23  ;;  %v2419_v40 = vld [vmem:[%s3174_s4 + $0x90] sm:$0xff]  ;;  %v2731_v46 = vld [vmem:[%s2653_s18 + $0x18] sm:$0xf]  ;;  %v346_v47 = vld [vmem:[%s2653_s18 + $0x1c] sm:$0x1] }
  0x15   : > { %703 = vmatpush.bf16.msra.mxu0 %v2406_v6  ;;  %2506 = vmatpush.bf16.msra.mxu1 %v2406_v6  ;;  %v408_v26 = vshll.u32 %v397_v20, 16  ;;  %v2715_v36 = vpack.c.b16 %v843_v32, %v842_v31  ;;  %v406_v38 = vshrl.u32 %v397_v20, 16  ;;  %v2431_v41 = vld [vmem:[%s3174_s4 + $0xd0] sm:$0xff]  ;;  %v2402_v48 = vld [vmem:[%s3174_s4 + $0x8] sm:$0xff]  ;;  %v2738_v49 = vld [vmem:[%s2653_s18 + $0x20] sm:$0xf]  ;;  %v387_v57 = vunpack.c.l.b16 %v2731_v46 }
  0x16   : > { %761 = vmatpush.bf16.msra.mxu2 %v2422_v7  ;;  %v415_v29 = vshll.u32 %v398_v21, 16  ;;  %v2711_v35 = vpack.c.b16 %v841_v30, %v840_v27  ;;  %v413_v42 = vshrl.u32 %v398_v21, 16  ;;  %v2727_v44 = vld [vmem:[%s2653_s18 + $0x10] sm:$0xf]  ;;  %v344_v45 = vld [vmem:[%s2653_s18 + $0x14] sm:$0x1]  ;;  %v388_v58 = vunpack.c.l.b16 %v346_v47 }
  0x17   : > { %1163 = vmatpush.bf16.msra.mxu3 %v2434_v8  ;;  %v410_v39 = vrot.slane %v408_v26, 1  ;;  %v2741_v50 = vld [vmem:[%s2653_s18 + $0x28] sm:$0xf]  ;;  %v385_v52 = vunpack.c.l.b16 %v2727_v44  ;;  %v2745_v53 = vld [vmem:[%s2674_s29 + $0x10] sm:$0xf]  ;;  %v386_v56 = vunpack.c.l.b16 %v344_v45  ;;  %v389_v63 = vunpack.c.l.b16 %v2738_v49  ;;  %v2401_v5 = vld [vmem:[%s3174_s4] sm:$0xff] }
  0x18   : > { %v417_v43 = vrot.slane %v415_v29, 1  ;;  %v803_v54 = vld [vmem:[%s2674_s29 + $0x14] sm:$0x1]  ;;  %v2750_v59 = vld [vmem:[%s2674_s29 + $0x18] sm:$0xf]  ;;  %v2418_v61 = vld [vmem:[%s3174_s4 + $0x88] sm:$0xff]  ;;  %v391_v0 = vunpack.c.l.b16 %v2741_v50  ;;  %v844_v1 = vunpack.c.l.b16 %v2745_v53  ;;  %v400_v10 = vpack.c.b16 %v388_v58, %v387_v57 }
  0x19   : > { %704 = vmatpush.bf16.msra.mxu0 %v2405_v17  ;;  %2507 = vmatpush.bf16.msra.mxu1 %v2405_v17  ;;  %v411_v51 = vor.u32 %v410_v39, %v406_v38  ;;  %v805_v60 = vld [vmem:[%s2674_s29 + $0x1c] sm:$0x1]  ;;  %v2430_v62 = vld [vmem:[%s3174_s4 + $0xc8] sm:$0xff]  ;;  %v845_v2 = vunpack.c.l.b16 %v803_v54  ;;  %v846_v3 = vunpack.c.l.b16 %v2750_v59  ;;  %v399_v8 = vpack.c.b16 %v386_v56, %v385_v52  ;;  %v2417_v12 = vld [vmem:[%s3174_s4 + $0x80] sm:$0xff] }
  0x1a   : > { %762 = vmatpush.bf16.msra.mxu2 %v2421_v18  ;;  %v418_v55 = vor.u32 %v417_v43, %v413_v42  ;;  %v847_v4 = vunpack.c.l.b16 %v805_v60  ;;  %v2416_v14 = vld [vmem:[%s3174_s4 + $0x78] sm:$0xff]  ;;  %v2429_v18 = vld [vmem:[%s3174_s4 + $0xc0] sm:$0xff]  ;;  %v533_v20 = vpack.c.b16 %v383_v15, %v381_v13  ;;  %v539_v21 = vpack.c.b16 %v391_v0, %v389_v63  ;;  %v2415_v9 = vld [vmem:[%s3174_s4 + $0x70] sm:$0xff] }
  0x1b   : > { %1164 = vmatpush.bf16.msra.mxu3 %v2433_v19  ;;  %v470_v6 = vunpack.c.l.b16 %v411_v51  ;;  %v2778_v16 = vpack.c.b16 %v845_v2, %v844_v1  ;;  %v2444_v19 = vld [vmem:[%s3174_s4 + $0x138] sm:$0xff]  ;;  %v422_v25 = vshll.u32 %v399_v8, 16  ;;  %v429_v26 = vshll.u32 %v400_v10, 16  ;;  %v348_v13 = vld [vmem:[%s2653_s18 + $0x24] sm:$0x1]  ;;  %v2443_v15 = vld [vmem:[%s3174_s4 + $0x130] sm:$0xff] }
  0x1c   : > { %v472_v7 = vunpack.c.l.b16 %v418_v55  ;;  %v2782_v17 = vpack.c.b16 %v847_v4, %v846_v3  ;;  %v993_v11 = vpack.c.b16 %v842_v31, %v840_v27  ;;  %v2464_v29 = vld [vmem:[%s3174_s4 + $0x1b8] sm:$0xff]  ;;  %v420_v22 = vshrl.u32 %v399_v8, 16  ;;  %v2816_v30 = vld [vmem:[%s2674_s29 + $0x20] sm:$0xf]  ;;  %v2819_v24 = vld [vmem:[%s2674_s29 + $0x28] sm:$0xf] }
  0x1d   : > { %705 = vmatpush.bf16.msra.mxu0 %v2404_v28  ;;  %2508 = vmatpush.bf16.msra.mxu1 %v2404_v28  ;;  %v2472_v28 = vld [vmem:[%s3174_s4 + $0x1f8] sm:$0xff]  ;;  %v424_v27 = vrot.slane %v422_v25, 1  ;;  %v427_v31 = vshrl.u32 %v400_v10, 16  ;;  %v431_v32 = vrot.slane %v429_v26, 1  ;;  %v2414_v38 = vld [vmem:[%s3174_s4 + $0x68] sm:$0xff]  ;;  %v2463_v43 = vld [vmem:[%s3174_s4 + $0x1b0] sm:$0xff]  ;;  %v850_v45 = vunpack.c.l.b16 %v2819_v24 }
  0x1e   : > { %763 = vmatpush.bf16.msra.mxu2 %v2420_v33  ;;  %v535_v23 = vpack.c.b16 %v472_v7, %v470_v6  ;;  %v2471_v33 = vld [vmem:[%s3174_s4 + $0x1f0] sm:$0xff]  ;;  %v809_v39 = vld [vmem:[%s2674_s29 + $0x2c] sm:$0x1]  ;;  %v2846_v56 = vld [vmem:[%s2653_s18 + $0x38] sm:$0xf]  ;;  %v536_v50 = vpack.c.b16 %v387_v57, %v385_v52  ;;  %v996_v44 = vpack.c.b16 %v846_v3, %v844_v1 }
  0x1f   : > { %1165 = vmatpush.bf16.msra.mxu3 %v2432_v34  ;;  %v807_v34 = vld [vmem:[%s2674_s29 + $0x24] sm:$0x1]  ;;  %v2442_v42 = vld [vmem:[%s3174_s4 + $0x128] sm:$0xff]  ;;  %v851_v47 = vunpack.c.l.b16 %v809_v39  ;;  %v2843_v55 = vld [vmem:[%s2653_s18 + $0x30] sm:$0xf]  ;;  %v425_v58 = vor.u32 %v424_v27, %v420_v22  ;;  %v432_v60 = vor.u32 %v431_v32, %v427_v31  ;;  %v395_v7 = vunpack.c.l.b16 %v2846_v56 }
  0x20   : > { %v2413_v2 = vld [vmem:[%s3174_s4 + $0x60] sm:$0xff]  ;;  %v393_v6 = vunpack.c.l.b16 %v2843_v55  ;;  %v352_v46 = vld [vmem:[%s2653_s18 + $0x34] sm:$0x1]  ;;  %v2460_v57 = vld [vmem:[%s3174_s4 + $0x198] sm:$0xff] }
  0x21   : > { %706 = vmatpush.bf16.msra.mxu0 %v2403_v37  ;;  %2509 = vmatpush.bf16.msra.mxu1 %v2403_v37  ;;  %v350_v37 = vld [vmem:[%s2653_s18 + $0x2c] sm:$0x1]  ;;  %v2441_v4 = vld [vmem:[%s3174_s4 + $0x120] sm:$0xff]  ;;  %v2439_v52 = vld [vmem:[%s3174_s4 + $0x110] sm:$0xff] }
  0x22   : > { %764 = vmatpush.bf16.msra.mxu2 %v2419_v40  ;;  %v848_v40 = vunpack.c.l.b16 %v2816_v30  ;;  %v392_v54 = vunpack.c.l.b16 %v350_v37  ;;  %v2461_v49 = vld [vmem:[%s3174_s4 + $0x1a0] sm:$0xff]  ;;  %v2905_v59 = vld [vmem:[%s2674_s29 + $0x30] sm:$0xf]  ;;  %v2908_v1 = vld [vmem:[%s2674_s29 + $0x38] sm:$0xf] }
  0x23   : > { %1166 = vmatpush.bf16.msra.mxu3 %v2431_v41  ;;  %v849_v41 = vunpack.c.l.b16 %v807_v34  ;;  %v2469_v53 = vld [vmem:[%s3174_s4 + $0x1e0] sm:$0xff]  ;;  %v2438_v27 = vld [vmem:[%s3174_s4 + $0x108] sm:$0xff]  ;;  %v854_v31 = vunpack.c.l.b16 %v2908_v1  ;;  %v394_v34 = vunpack.c.l.b16 %v352_v46 }
  0x24   : > { %v402_v10 = vpack.c.b16 %v392_v54, %v391_v0  ;;  %v1940_v54 = vld [vmem:[%s2928_s19] sm:$0xf] }
  0x25   : > { %707 = vmatpush.bf16.msra.mxu0 %v2402_v48  ;;  %2510 = vmatpush.bf16.msra.mxu1 %v2402_v48  ;;  %v390_v48 = vunpack.c.l.b16 %v348_v13  ;;  %v2840_v51 = vpack.c.b16 %v849_v41, %v848_v40  ;;  %v2410_v13 = vld [vmem:[%s3174_s4 + $0x48] sm:$0xff]  ;;  %v2465_v46 = vld [vmem:[%s3174_s4 + $0x1c0] sm:$0xff] }
  0x26   : > { %765 = vmatpush.bf16.msra.mxu2 %v2418_v61  ;;  %v2850_v61 = vpack.c.b16 %v851_v47, %v850_v45  ;;  %v441_v26 = vshrl.u32 %v402_v10, 16  ;;  %v2409_v47 = vld [vmem:[%s3174_s4 + $0x40] sm:$0xff] }
  0x27   : > { %1167 = vmatpush.bf16.msra.mxu3 %v2430_v62  ;;  %v2470_v62 = vld [vmem:[%s3174_s4 + $0x1e8] sm:$0xff]  ;;  %v401_v8 = vpack.c.b16 %v390_v48, %v389_v63  ;;  %v542_v63 = vpack.c.b16 %v395_v7, %v393_v6  ;;  %v2437_v48 = vld [vmem:[%s3174_s4 + $0x100] sm:$0xff] }
  0x29   : > { %708 = vmatpush.bf16.msra.mxu0 %v2401_v5  ;;  %2511 = vmatpush.bf16.msra.mxu1 %v2401_v5  ;;  %v2462_v5 = vld [vmem:[%s3174_s4 + $0x1a8] sm:$0xff]  ;;  %v434_v3 = vshrl.u32 %v401_v8, 16 }
  0x2a   : > { %766 = vmatpush.bf16.msra.mxu2 %v2417_v12  ;;  %v474_v12 = vunpack.c.l.b16 %v425_v58  ;;  %v2452_v58 = vld [vmem:[%s3174_s4 + $0x178] sm:$0xff] }
  0x2b   : > { %1168 = vmatpush.bf16.msra.mxu3 %v2429_v18  ;;  %v2412_v18 = vld [vmem:[%s3174_s4 + $0x58] sm:$0xff] }
  0x2c   : > { %709 = vmatmul.bf16.vlgmr.msra.gmra.mxu0 %v533_v20  ;;  %719 = vmatmul.bf16.vlgmr.msra.gmra.mxu1 %v539_v21  ;;  %v436_v20 = vshll.u32 %v401_v8, 16  ;;  %v443_v21 = vshll.u32 %v402_v10, 16 }
  0x2d   : > { %730 = vmatpush.bf16.msrb.mxu1 %v2416_v14  ;;  %1190 = vmatpush.bf16.msrb.mxu0 %v2444_v19  ;;  %v476_v14 = vunpack.c.l.b16 %v432_v60  ;;  %v2440_v19 = vld [vmem:[%s3174_s4 + $0x118] sm:$0xff]  ;;  %v2397_v60 = vld [vmem:[%s2928_s19 + $0x4] sm:$0xf0] }
  0x2e   : > { %767 = vmatmul.bf16.vlgmr.msra.gmra.mxu2 %v535_v23  ;;  %1169 = vmatmul.bf16.vlgmr.msra.gmra.mxu3 %v993_v11  ;;  %v2411_v23 = vld [vmem:[%s3174_s4 + $0x50] sm:$0xff]  ;;  %v438_v25 = vrot.slane %v436_v20, 1  ;;  %v354_v11 = vld [vmem:[%s2653_s18 + $0x3c] sm:$0x1]  ;;  %v1941_v55 = vor.u32 %v2397_v60, %v1940_v54  ;;  %v2450_v20 = vld [vmem:[%s3174_s4 + $0x168] sm:$0xff] }
  0x2f   : > { %1668 = vmatpush.bf16.msrb.mxu3 %v2472_v28  ;;  %1639 = vmatpush.bf16.msrb.mxu2 %v2464_v29  ;;  %v538_v0 = vpack.c.b16 %v476_v14, %v474_v12  ;;  %v445_v28 = vrot.slane %v443_v21, 1  ;;  %v852_v29 = vunpack.c.l.b16 %v2905_v59  ;;  %v396_v39 = vunpack.c.l.b16 %v354_v11  ;;  %v2100_v12 = vld [vmem:[%s2948_s7] sm:$0xf]  ;;  %v2425_v14 = vld [vmem:[%s2948_s7 + $0x4] sm:$0xf0]  ;;  %v2476_v54 = vld [vmem:[%s3174_s4 + $0x218] sm:$0xff] }
  0x30   : > { %v439_v41 = vor.u32 %v438_v25, %v434_v3  ;;  %v2466_v21 = vld [vmem:[%s3174_s4 + $0x1c8] sm:$0xff]  ;;  %v867_v3 = vshll.u32 %v2711_v35, 16  ;;  %v874_v25 = vshll.u32 %v2715_v36, 16 }
  0x31   : > { %731 = vmatpush.bf16.msrb.mxu1 %v2415_v9  ;;  %1191 = vmatpush.bf16.msrb.mxu0 %v2443_v15  ;;  %v811_v9 = vld [vmem:[%s2674_s29 + $0x34] sm:$0x1]  ;;  %v813_v15 = vld [vmem:[%s2674_s29 + $0x3c] sm:$0x1]  ;;  %v2210_v60 = vld [vmem:[%s2653_s18 + $0x8] sm:$0xf] }
  0x32   : > { %v853_v22 = vunpack.c.l.b16 %v811_v9  ;;  %v855_v32 = vunpack.c.l.b16 %v813_v15  ;;  %v478_v8 = vunpack.c.l.b16 %v439_v41  ;;  %v2398_v9 = vld [vmem:[%s2928_s19 + $0x14] sm:$0xf0]  ;;  %v2104_v15 = vld [vmem:[%s2948_s7 + $0x10] sm:$0xf] }
  0x33   : > { %1669 = vmatpush.bf16.msrb.mxu3 %v2471_v33  ;;  %1640 = vmatpush.bf16.msrb.mxu2 %v2463_v43  ;;  %v2459_v33 = vld [vmem:[%s3174_s4 + $0x190] sm:$0xff] }
  0x34   : > { %v2932_v37 = vpack.c.b16 %v853_v22, %v852_v29  ;;  %v2939_v43 = vpack.c.b16 %v855_v32, %v854_v31  ;;  %v2426_v22 = vld [vmem:[%s2948_s7 + $0x14] sm:$0xf0]  ;;  %v869_v32 = vrot.slane %v867_v3, 1  ;;  %v1952_v3 = vld [vmem:[%s2928_s19 + $0x30] sm:$0xf] }
  0x35   : > { %732 = vmatpush.bf16.msrb.mxu1 %v2414_v38  ;;  %1192 = vmatpush.bf16.msrb.mxu0 %v2442_v42  ;;  %v2468_v38 = vld [vmem:[%s3174_s4 + $0x1d8] sm:$0xff]  ;;  %v446_v42 = vor.u32 %v445_v28, %v441_v26  ;;  %v1944_v28 = vld [vmem:[%s2928_s19 + $0x10] sm:$0xf]  ;;  %v2105_v41 = vor.u32 %v2426_v22, %v2104_v15  ;;  %v2454_v22 = vld [vmem:[%s2928_s19 + $0x1c] sm:$0xf0] }
  0x36   : > { %v2448_v26 = vld [vmem:[%s3174_s4 + $0x158] sm:$0xff] }
  0x37   : > { %1670 = vmatpush.bf16.msrb.mxu3 %v2470_v62  ;;  %1641 = vmatpush.bf16.msrb.mxu2 %v2462_v5  ;;  %v2480_v62 = vld [vmem:[%s3174_s4 + $0x238] sm:$0xff]  ;;  %v404_v5 = vpack.c.b16 %v396_v39, %v395_v7  ;;  %v480_v10 = vunpack.c.l.b16 %v446_v42  ;;  %v1945_v39 = vor.u32 %v2398_v9, %v1944_v28  ;;  %v2112_v28 = vld [vmem:[%s2948_s7 + $0x30] sm:$0xf] }
  0x38   : > { %v2428_v9 = vld [vmem:[%s2948_s7 + $0x34] sm:$0xf0] }
  0x39   : > { %733 = vmatpush.bf16.msrb.mxu1 %v2413_v2  ;;  %1193 = vmatpush.bf16.msrb.mxu0 %v2441_v4  ;;  %v2458_v2 = vld [vmem:[%s3174_s4 + $0x188] sm:$0xff]  ;;  %v403_v4 = vpack.c.b16 %v394_v34, %v393_v6  ;;  %v2101_v6 = vor.u32 %v2425_v14, %v2100_v12  ;;  %v541_v56 = vpack.c.b16 %v480_v10, %v478_v8  ;;  %v455_v24 = vshrl.u32 %v404_v5, 16  ;;  %v2108_v8 = vld [vmem:[%s2948_s7 + $0x20] sm:$0xf]  ;;  %v2288_v15 = vld [vmem:[%s2928_s19 + $0x18] sm:$0xf] }
  0x3a   : > { %v876_v34 = vrot.slane %v874_v25, 1  ;;  %v2427_v10 = vld [vmem:[%s2948_s7 + $0x24] sm:$0xf0]  ;;  %v1318_v12 = vunpack.c.l.b16 %v2210_v60  ;;  %s2396_s7 = sshll.u32 %s3182_s21, 5 }
  0x3b   : > { %1642 = vmatpush.bf16.msrb.mxu2 %v2461_v49  ;;  %1671 = vmatpush.bf16.msrb.mxu3 %v2469_v53  ;;  %v450_v7 = vshll.u32 %v403_v4, 16  ;;  %v457_v49 = vshll.u32 %v404_v5, 16  ;;  %v448_v30 = vshrl.u32 %v403_v4, 16  ;;  %v2477_v53 = vld [vmem:[%s3174_s4 + $0x220] sm:$0xff]  ;;  %v2399_v5 = vld [vmem:[%s2928_s19 + $0x24] sm:$0xf0]  ;;  %s3135_s25 = scalar_lea.vmem %s3176_s6, %s2396_s7 }
  0x3c   : > { %714 = vmatmul.bf16.gmra.mxu0 %v536_v50  ;;  %724 = vmatmul.bf16.gmra.mxu1 %v542_v63  ;;  %v2479_v50 = vld [vmem:[%s3174_s4 + $0x230] sm:$0xff]  ;;  %v999_v63 = vpack.c.b16 %v850_v45, %v848_v40  ;;  %v2478_v45 = vld [vmem:[%s3174_s4 + $0x228] sm:$0xff]  ;;  %v1948_v4 = vld [vmem:[%s2928_s19 + $0x20] sm:$0xf] }
  0x3d   : > { %734 = vmatpush.bf16.msrb.mxu1 %v2412_v18  ;;  %1194 = vmatpush.bf16.msrb.mxu0 %v2440_v19  ;;  %v2467_v18 = vld [vmem:[%s3174_s4 + $0x1d0] sm:$0xff]  ;;  %v459_v40 = vrot.slane %v457_v49, 1  ;;  %v2218_v60 = vld [vmem:[%s2653_s18 + $0x28] sm:$0xf] }
  0x3e   : > { %772 = vmatmul.bf16.gmra.mxu2 %v538_v0  ;;  %1174 = vmatmul.bf16.gmra.mxu3 %v996_v44  ;;  %v2451_v19 = vld [vmem:[%s3174_s4 + $0x170] sm:$0xff]  ;;  %v2457_v0 = vld [vmem:[%s3174_s4 + $0x180] sm:$0xff] }
  0x3f   : > { %1643 = vmatpush.bf16.msrb.mxu2 %v2460_v57  ;;  %1672 = vmatpush.bf16.msrb.mxu3 %v2468_v38  ;;  %v2449_v44 = vld [vmem:[%s3174_s4 + $0x160] sm:$0xff]  ;;  %v460_v57 = vor.u32 %v459_v40, %v455_v24  ;;  %v2447_v38 = vld [vmem:[%s3174_s4 + $0x150] sm:$0xff] }
  0x41   : > { %735 = vmatpush.bf16.msrb.mxu1 %v2411_v23  ;;  %1195 = vmatpush.bf16.msrb.mxu0 %v2439_v52  ;;  %v452_v23 = vrot.slane %v450_v7, 1 }
  0x43   : > { %1644 = vmatpush.bf16.msrb.mxu2 %v2459_v33  ;;  %1673 = vmatpush.bf16.msrb.mxu3 %v2467_v18  ;;  %v453_v52 = vor.u32 %v452_v23, %v448_v30  ;;  %v872_v33 = vshrl.u32 %v2715_v36, 16  ;;  %v2446_v36 = vld [vmem:[%s3174_s4 + $0x148] sm:$0xff]  ;;  %v888_v30 = vshll.u32 %v2782_v17, 16 }
  0x44   : > { %v2284_v18 = vld [vmem:[%s2928_s19 + $0x8] sm:$0xf] }
  0x45   : > { %736 = vmatpush.bf16.msrb.mxu1 %v2410_v13  ;;  %1196 = vmatpush.bf16.msrb.mxu0 %v2438_v27  ;;  %v482_v11 = vunpack.c.l.b16 %v453_v52  ;;  %v484_v13 = vunpack.c.l.b16 %v460_v57  ;;  %v865_v27 = vshrl.u32 %v2711_v35, 16  ;;  %v1002_v35 = vpack.c.b16 %v854_v31, %v852_v29  ;;  %v2475_v29 = vld [vmem:[%s3174_s4 + $0x210] sm:$0xff]  ;;  %v2445_v31 = vld [vmem:[%s3174_s4 + $0x140] sm:$0xff] }
  0x47   : > { %1645 = vmatpush.bf16.msrb.mxu2 %v2458_v2  ;;  %1674 = vmatpush.bf16.msrb.mxu3 %v2466_v21  ;;  %v544_v42 = vpack.c.b16 %v484_v13, %v482_v11  ;;  %v2474_v2 = vld [vmem:[%s3174_s4 + $0x208] sm:$0xff]  ;;  %v886_v21 = vshrl.u32 %v2782_v17, 16 }
  0x49   : > { %737 = vmatpush.bf16.msrb.mxu1 %v2409_v47  ;;  %1197 = vmatpush.bf16.msrb.mxu0 %v2437_v48  ;;  %v870_v47 = vor.u32 %v869_v32, %v865_v27  ;;  %v877_v48 = vor.u32 %v876_v34, %v872_v33 }
  0x4b   : > { %1646 = vmatpush.bf16.msrb.mxu2 %v2457_v0  ;;  %1675 = vmatpush.bf16.msrb.mxu3 %v2465_v46  ;;  %v929_v59 = vunpack.c.l.b16 %v870_v47  ;;  %v931_v1 = vunpack.c.l.b16 %v877_v48  ;;  %v879_v0 = vshrl.u32 %v2778_v16, 16  ;;  %v2216_v46 = vld [vmem:[%s2653_s18 + $0x20] sm:$0xf] }
  0x4c   : > { %738 = vmatmul.bf16.vlgmr.msrb.gmra.mxu1 %v1941_v55  ;;  %1198 = vmatmul.bf16.vlgmr.msrb.gmra.mxu0 %v2101_v6  ;;  %v2473_v55 = vld [vmem:[%s3174_s4 + $0x200] sm:$0xff]  ;;  %v1949_v6 = vor.u32 %v2399_v5, %v1948_v4  ;;  %v1324_v13 = vunpack.c.l.b16 %v2216_v46  ;;  %v902_v4 = vshll.u32 %v2850_v61, 16 }
  0x4d   : > { %1219 = vmatpush.bf16.msra.mxu1 %v2452_v58  ;;  %1697 = vmatpush.bf16.msra.mxu0 %v2480_v62  ;;  %v3034_v58 = vpack.c.b16 %v931_v1, %v929_v59 }
  0x4e   : > { %777 = vmatmul.bf16.gmra.mxu2 %v541_v56  ;;  %1179 = vmatmul.bf16.gmra.mxu3 %v999_v63  ;;  %v2109_v56 = vor.u32 %v2427_v10, %v2108_v8  ;;  %v2213_v63 = vld [vmem:[%s2653_s18 + $0x14] sm:$0x1] }
  0x4f   : > { %2512 = vmatpush.bf16.msra.mxu2 %v2480_v62  ;;  %v2212_v62 = vld [vmem:[%s2653_s18 + $0x10] sm:$0xf]  ;;  %v1321_v24 = vunpack.c.l.b16 %v2213_v63 }
  0x50   : > { %v1320_v14 = vunpack.c.l.b16 %v2212_v62  ;;  %v2220_v62 = vld [vmem:[%s2653_s18 + $0x30] sm:$0xf] }
  0x51   : > { %1220 = vmatpush.bf16.msra.mxu1 %v2451_v19  ;;  %1698 = vmatpush.bf16.msra.mxu0 %v2479_v50  ;;  %v2453_v19 = vld [vmem:[%s2928_s19 + $0xc] sm:$0xf0] }
  0x52   : > { %v1471_v7 = vpack.c.b16 %v1320_v14, %v1318_v12  ;;  %v2285_v49 = vor.u32 %v2453_v19, %v2284_v18  ;;  %v1328_v18 = vunpack.c.l.b16 %v2220_v62  ;;  %v893_v19 = vshrl.u32 %v2840_v51, 16 }
  0x53   : > { %2513 = vmatpush.bf16.msra.mxu2 %v2479_v50  ;;  %v2211_v50 = vld [vmem:[%s2653_s18 + $0xc] sm:$0x1] }
  0x54   : > { %v1319_v23 = vunpack.c.l.b16 %v2211_v50 }
  0x55   : > { %1221 = vmatpush.bf16.msra.mxu1 %v2450_v20  ;;  %1699 = vmatpush.bf16.msra.mxu0 %v2478_v45  ;;  %v881_v20 = vshll.u32 %v2778_v16, 16  ;;  %v1335_v16 = vpack.c.b16 %v1321_v24, %v1320_v14  ;;  %v1326_v14 = vunpack.c.l.b16 %v2218_v60 }
  0x57   : > { %2514 = vmatpush.bf16.msra.mxu2 %v2478_v45  ;;  %v883_v40 = vrot.slane %v881_v20, 1  ;;  %v890_v45 = vrot.slane %v888_v30, 1  ;;  %v1352_v33 = vshll.u32 %v1335_v16, 16  ;;  %v1350_v48 = vshrl.u32 %v1335_v16, 16  ;;  %v2225_v16 = vld [vmem:[%s2653_s18 + $0x44] sm:$0x1] }
  0x58   : > { %v1477_v30 = vpack.c.b16 %v1328_v18, %v1326_v14 }
  0x59   : > { %1222 = vmatpush.bf16.msra.mxu1 %v2449_v44  ;;  %1700 = vmatpush.bf16.msra.mxu0 %v2477_v53  ;;  %v2214_v44 = vld [vmem:[%s2653_s18 + $0x18] sm:$0xf]  ;;  %v884_v52 = vor.u32 %v883_v40, %v879_v0  ;;  %v891_v57 = vor.u32 %v890_v45, %v886_v21 }
  0x5a   : > { %v1322_v11 = vunpack.c.l.b16 %v2214_v44 }
  0x5b   : > { %2515 = vmatpush.bf16.msra.mxu2 %v2477_v53  ;;  %v1334_v53 = vpack.c.b16 %v1319_v23, %v1318_v12  ;;  %v933_v25 = vunpack.c.l.b16 %v884_v52  ;;  %v935_v17 = vunpack.c.l.b16 %v891_v57 }
  0x5c   : > { %743 = vmatmul.bf16.gmra.mxu1 %v1945_v39  ;;  %1203 = vmatmul.bf16.gmra.mxu0 %v2105_v41  ;;  %v1474_v39 = vpack.c.b16 %v1324_v13, %v1322_v11  ;;  %v2289_v41 = vor.u32 %v2454_v22, %v2288_v15 }
  0x5d   : > { %1223 = vmatpush.bf16.msra.mxu1 %v2448_v26  ;;  %1701 = vmatpush.bf16.msra.mxu0 %v2476_v54  ;;  %v2400_v26 = vld [vmem:[%s2928_s19 + $0x34] sm:$0xf0]  ;;  %v3064_v27 = vpack.c.b16 %v935_v17, %v933_v25  ;;  %v1345_v32 = vshll.u32 %v1334_v53, 16 }
  0x5e   : > { %782 = vmatmul.bf16.gmra.mxu2 %v544_v42  ;;  %1184 = vmatmul.bf16.gmra.mxu3 %v1002_v35  ;;  %v1953_v34 = vor.u32 %v2400_v26, %v1952_v3  ;;  %v1343_v42 = vshrl.u32 %v1334_v53, 16  ;;  %v1354_v35 = vrot.slane %v1352_v33, 1  ;;  %v2223_v53 = vld [vmem:[%s2653_s18 + $0x3c] sm:$0x1]  ;;  %v2222_v26 = vld [vmem:[%s2653_s18 + $0x38] sm:$0xf] }
  0x5f   : > { %2516 = vmatpush.bf16.msra.mxu2 %v2476_v54  ;;  %v1347_v47 = vrot.slane %v1345_v32, 1  ;;  %v2217_v54 = vld [vmem:[%s2653_s18 + $0x24] sm:$0x1]  ;;  %v1330_v17 = vunpack.c.l.b16 %v2222_v26  ;;  %v909_v33 = vshll.u32 %v2932_v37, 16 }
  0x60   : > { %v1325_v1 = vunpack.c.l.b16 %v2217_v54  ;;  %v2296_v54 = vld [vmem:[%s2928_s19 + $0x38] sm:$0xf] }
  0x61   : > { %1224 = vmatpush.bf16.msra.mxu1 %v2447_v38  ;;  %1702 = vmatpush.bf16.msra.mxu0 %v2475_v29  ;;  %v2113_v38 = vor.u32 %v2428_v9, %v2112_v28  ;;  %v2224_v28 = vld [vmem:[%s2653_s18 + $0x40] sm:$0xf]  ;;  %v1331_v9 = vunpack.c.l.b16 %v2223_v53 }
  0x62   : > { %v1337_v8 = vpack.c.b16 %v1325_v1, %v1324_v13  ;;  %v1332_v15 = vunpack.c.l.b16 %v2224_v28 }
  0x63   : > { %2517 = vmatpush.bf16.msra.mxu2 %v2475_v29  ;;  %v1348_v29 = vor.u32 %v1347_v47, %v1343_v42  ;;  %v907_v47 = vshrl.u32 %v2932_v37, 16 }
  0x64   : > { %v1366_v20 = vshll.u32 %v1337_v8, 16  ;;  %v1364_v46 = vshrl.u32 %v1337_v8, 16 }
  0x65   : > { %1225 = vmatpush.bf16.msra.mxu1 %v2446_v36  ;;  %1703 = vmatpush.bf16.msra.mxu0 %v2474_v2  ;;  %v2215_v36 = vld [vmem:[%s2653_s18 + $0x1c] sm:$0x1]  ;;  %v1407_v10 = vunpack.c.l.b16 %v1348_v29 }
  0x66   : > { %v1323_v59 = vunpack.c.l.b16 %v2215_v36  ;;  %v1368_v52 = vrot.slane %v1366_v20, 1 }
  0x67   : > { %2518 = vmatpush.bf16.msra.mxu2 %v2474_v2  ;;  %v895_v2 = vshll.u32 %v2840_v51, 16  ;;  %v2219_v51 = vld [vmem:[%s2653_s18 + $0x2c] sm:$0x1] }
  0x68   : > { %v1336_v5 = vpack.c.b16 %v1323_v59, %v1322_v11  ;;  %v1327_v3 = vunpack.c.l.b16 %v2219_v51  ;;  %v1333_v11 = vunpack.c.l.b16 %v2225_v16  ;;  %v2456_v59 = vld [vmem:[%s2928_s19 + $0x3c] sm:$0xf0] }
  0x69   : > { %1226 = vmatpush.bf16.msra.mxu1 %v2445_v31  ;;  %1704 = vmatpush.bf16.msra.mxu0 %v2473_v55  ;;  %v1355_v31 = vor.u32 %v1354_v35, %v1350_v48  ;;  %v911_v48 = vrot.slane %v909_v33, 1  ;;  %v914_v35 = vshrl.u32 %v2939_v43, 16 }
  0x6a   : > { %v1359_v0 = vshll.u32 %v1336_v5, 16  ;;  %v1357_v45 = vshrl.u32 %v1336_v5, 16  ;;  %v1338_v22 = vpack.c.b16 %v1327_v3, %v1326_v14 }
  0x6b   : > { %2519 = vmatpush.bf16.msra.mxu2 %v2473_v55  ;;  %v1409_v12 = vunpack.c.l.b16 %v1355_v31  ;;  %v897_v55 = vrot.slane %v895_v2, 1  ;;  %v912_v1 = vor.u32 %v911_v48, %v907_v47  ;;  %v1480_v31 = vpack.c.b16 %v1332_v15, %v1330_v17 }
  0x6c   : > { %748 = vmatmul.bf16.gmra.mxu1 %v1949_v6  ;;  %1208 = vmatmul.bf16.gmra.mxu0 %v2109_v56  ;;  %v900_v6 = vshrl.u32 %v2850_v61, 16  ;;  %v904_v56 = vrot.slane %v902_v4, 1  ;;  %v2221_v61 = vld [vmem:[%s2653_s18 + $0x34] sm:$0x1]  ;;  %v1361_v44 = vrot.slane %v1359_v0, 1  ;;  %v1373_v62 = vshll.u32 %v1338_v22, 16 }
  0x6d   : > { %v898_v50 = vor.u32 %v897_v55, %v893_v19  ;;  %v1473_v63 = vpack.c.b16 %v1409_v12, %v1407_v10  ;;  %v1329_v25 = vunpack.c.l.b16 %v2221_v61  ;;  %v941_v8 = vunpack.c.l.b16 %v912_v1 }
  0x6e   : > { %1647 = vmatmul.bf16.vlgmr.msrb.gmra.mxu2 %v1471_v7  ;;  %1676 = vmatmul.bf16.vlgmr.msrb.gmra.mxu3 %v2285_v49  ;;  %v2292_v7 = vld [vmem:[%s2928_s19 + $0x28] sm:$0xf]  ;;  %v2455_v49 = vld [vmem:[%s2928_s19 + $0x2c] sm:$0xf0]  ;;  %v905_v21 = vor.u32 %v904_v56, %v900_v6  ;;  %v1362_v13 = vor.u32 %v1361_v44, %v1357_v45  ;;  %v2297_v12 = vor.u32 %v2456_v59, %v2296_v54  ;;  %v1371_v37 = vshrl.u32 %v1338_v22, 16 }
  0x6f   : > { %v937_v23 = vunpack.c.l.b16 %v898_v50  ;;  %v2293_v24 = vor.u32 %v2455_v49, %v2292_v7  ;;  %v1339_v32 = vpack.c.b16 %v1329_v25, %v1328_v18 }
  0x70   : > { %v939_v40 = vunpack.c.l.b16 %v905_v21 }
  0x71   : > { %v1380_v2 = vshll.u32 %v1339_v32, 16  ;;  %v1378_v18 = vshrl.u32 %v1339_v32, 16 }
  0x72   : > { %v3079_v57 = vpack.c.b16 %v939_v40, %v937_v23 }
  0x73   : > { %v1382_v19 = vrot.slane %v1380_v2, 1 }
  0x75   : > { %v1383_v50 = vor.u32 %v1382_v19, %v1378_v18 }
  0x77   : > { %v1417_v21 = vunpack.c.l.b16 %v1383_v50 }
  0x7c   : > { %753 = vmatmul.bf16.gmra.mxu1 %v1953_v34  ;;  %1213 = vmatmul.bf16.gmra.mxu0 %v2113_v38  ;;  %v916_v34 = vshll.u32 %v2939_v43, 16  ;;  %v1340_v38 = vpack.c.b16 %v1331_v9, %v1330_v17  ;;  %v1375_v43 = vrot.slane %v1373_v62, 1 }
  0x7e   : > { %1652 = vmatmul.bf16.gmra.mxu2 %v1474_v39  ;;  %1681 = vmatmul.bf16.gmra.mxu3 %v2289_v41  ;;  %v1341_v39 = vpack.c.b16 %v1333_v11, %v1332_v15  ;;  %v1411_v41 = vunpack.c.l.b16 %v1362_v13  ;;  %v918_v36 = vrot.slane %v916_v34, 1  ;;  %v1387_v4 = vshll.u32 %v1340_v38, 16 }
  0x7f   : > { %v1385_v55 = vshrl.u32 %v1340_v38, 16  ;;  %v1376_v49 = vor.u32 %v1375_v43, %v1371_v37 }
  0x80   : > { %v919_v29 = vor.u32 %v918_v36, %v914_v35  ;;  %v1394_v5 = vshll.u32 %v1341_v39, 16  ;;  %v1389_v6 = vrot.slane %v1387_v4, 1  ;;  %v1392_v56 = vshrl.u32 %v1341_v39, 16 }
  0x81   : > { %v1415_v20 = vunpack.c.l.b16 %v1376_v49 }
  0x82   : > { %v943_v10 = vunpack.c.l.b16 %v919_v29  ;;  %v1396_v7 = vrot.slane %v1394_v5, 1 }
  0x84   : > { %v1004_v14 = vpack.c.b16 %v943_v10, %v941_v8  ;;  %v1397_v0 = vor.u32 %v1396_v7, %v1392_v56 }
  0x86   : > { %v1421_v23 = vunpack.c.l.b16 %v1397_v0 }
  0x8c   : > { %1227 = vmatmul.bf16.vlgmr.msra.gmra.mxu1 %v3034_v58  ;;  %1705 = vmatmul.bf16.vlgmr.msra.gmra.mxu0 %v1473_v63  ;;  %v1369_v58 = vor.u32 %v1368_v52, %v1364_v46  ;;  %v1390_v63 = vor.u32 %v1389_v6, %v1385_v55 }
  0x8e   : > { %1657 = vmatmul.bf16.gmra.mxu2 %v1477_v30  ;;  %1686 = vmatmul.bf16.gmra.mxu3 %v2293_v24  ;;  %v1413_v42 = vunpack.c.l.b16 %v1369_v58  ;;  %v1419_v30 = vunpack.c.l.b16 %v1390_v63 }
  0x90   : > { %v1476_v60 = vpack.c.b16 %v1413_v42, %v1411_v41  ;;  %v1482_v51 = vpack.c.b16 %v1421_v23, %v1419_v30 }
  0x9c   : > { %1232 = vmatmul.bf16.gmra.mxu1 %v3064_v27  ;;  %1710 = vmatmul.bf16.gmra.mxu0 %v1476_v60  ;;  %v1479_v27 = vpack.c.b16 %v1417_v21, %v1415_v20 }
  0x9e   : > { %1662 = vmatmul.bf16.gmra.mxu2 %v1480_v31  ;;  %1691 = vmatmul.bf16.gmra.mxu3 %v2297_v12 }
  0xa9   : > { %v710_v24 = vpop.f32.mrf.mxu0  ;;  %v720_v40 = vpop.f32.mrf.mxu1 }
  0xac   : > { %1237 = vmatmul.bf16.gmra.mxu1 %v3079_v57  ;;  %1715 = vmatmul.bf16.gmra.mxu0 %v1479_v27 }
  0xae   : > { %1720 = vmatmul.bf16.vlgmr.msra.gmra.mxu2 %v1482_v51 }
  0xb1   : > { %v768_v45 = vpop.f32.mrf.mxu2  ;;  %v712_v61 = vpop.f32.mrf.mxu0 }
  0xb2   : > { %v722_v44 = vpop.f32.mrf.mxu1  ;;  %v1170_v46 = vpop.f32.mrf.mxu3 }
  0xb9   : > { %v770_v52 = vpop.f32.mrf.mxu2  ;;  %v715_v53 = vpop.f32.mrf.mxu0 }
  0xba   : > { %v725_v16 = vpop.f32.mrf.mxu1  ;;  %v3093_v3 = vpop.f32.mrf.mxu3 }
  0xbc   : > { %1242 = vmatmul.bf16.gmra.mxu1 %v1004_v14 }
  0xc1   : > { %v773_v25 = vpop.f32.mrf.mxu2  ;;  %v717_v26 = vpop.f32.mrf.mxu0 }
  0xc2   : > { %v727_v28 = vpop.f32.mrf.mxu1  ;;  %v1175_v9 = vpop.f32.mrf.mxu3 }
  0xc9   : > { %v775_v11 = vpop.f32.mrf.mxu2  ;;  %v1199_v58 = vpop.f32.mrf.mxu0 }
  0xca   : > { %v739_v13 = vpop.f32.mrf.mxu1  ;;  %v1200_v17 = vadd.f32 %v1199_v58, %v1170_v46  ;;  %v3095_v15 = vpop.f32.mrf.mxu3 }
  0xcb   : > { %v740_v57 = vadd.f32 %v739_v13, %v710_v24 }
  0xcd   : > { %v769_v22 = vadd.f32 %v768_v45, %v740_v57 }
  0xd1   : > { %v778_v32 = vpop.f32.mrf.mxu2  ;;  %v1201_v34 = vpop.f32.mrf.mxu0 }
  0xd2   : > { %v741_v33 = vpop.f32.mrf.mxu1  ;;  %v1180_v39 = vpop.f32.mrf.mxu3 }
  0xd3   : > { %v742_v38 = vadd.f32 %v741_v33, %v712_v61 }
  0xd5   : > { %v771_v41 = vadd.f32 %v770_v52, %v742_v38 }
  0xd9   : > { %v780_v42 = vpop.f32.mrf.mxu2  ;;  %v1204_v48 = vpop.f32.mrf.mxu0 }
  0xda   : > { %v744_v47 = vpop.f32.mrf.mxu1  ;;  %v1205_v36 = vadd.f32 %v1204_v48, %v1175_v9  ;;  %v3097_v54 = vpop.f32.mrf.mxu3 }
  0xdb   : > { %v745_v35 = vadd.f32 %v744_v47, %v715_v53 }
  0xdd   : > { %v3099_v59 = vadd.f32 %v773_v25, %v745_v35 }
  0xe1   : > { %v783_v1 = vpop.f32.mrf.mxu2  ;;  %v3101_v31 = vpop.f32.mrf.mxu0 }
  0xe2   : > { %v746_v29 = vpop.f32.mrf.mxu1  ;;  %v1185_v2 = vpop.f32.mrf.mxu3 }
  0xe3   : > { %v747_v60 = vadd.f32 %v746_v29, %v717_v26 }
  0xe5   : > { %v3103_v62 = vadd.f32 %v775_v11, %v747_v60  ;;  %v1207_v60 = vadd.f32 %v3101_v31, %v3095_v15 }
  0xe9   : > { %v785_v4 = vpop.f32.mrf.mxu2  ;;  %v1209_v8 = vpop.f32.mrf.mxu0 }
  0xea   : > { %v749_v5 = vpop.f32.mrf.mxu1  ;;  %v3105_v12 = vadd.f32 %v1209_v8, %v1180_v39  ;;  %v3109_v37 = vpop.f32.mrf.mxu3 }
  0xeb   : > { %v750_v10 = vadd.f32 %v749_v5, %v720_v40 }
  0xed   : > { %v3107_v14 = vadd.f32 %v778_v32, %v750_v10 }
  0xf1   : > { %v1648_v43 = vpop.f32.mrf.mxu2  ;;  %v3111_v19 = vpop.f32.mrf.mxu0 }
  0xf2   : > { %v751_v18 = vpop.f32.mrf.mxu1  ;;  %v1677_v56 = vpop.f32.mrf.mxu3 }
  0xf3   : > { %v752_v55 = vadd.f32 %v751_v18, %v722_v44  ;;  %v1678_v53 = vadd.f32 %v1677_v56, %v1648_v43 }
  0xf5   : > { %v3113_v6 = vadd.f32 %v780_v42, %v752_v55 }
  0xf9   : > { %v1650_v7 = vpop.f32.mrf.mxu2  ;;  %v1214_v50 = vpop.f32.mrf.mxu0 }
  0xfa   : > { %v754_v49 = vpop.f32.mrf.mxu1  ;;  %v3115_v0 = vadd.f32 %v1214_v50, %v1185_v2  ;;  %v1679_v27 = vpop.f32.mrf.mxu3 }
  0xfb   : > { %v755_v63 = vadd.f32 %v754_v49, %v725_v16  ;;  %v1202_v16 = vadd.f32 %v1201_v34, %v3093_v3  ;;  %v1680_v13 = vadd.f32 %v1679_v27, %v1650_v7 }
  0xfd   : > { %v3117_v20 = vadd.f32 %v783_v1, %v755_v63 }
 0x101   : > { %v1653_v21 = vpop.f32.mrf.mxu2  ;;  %v3119_v23 = vpop.f32.mrf.mxu0 }
 0x102   : > { %v756_v30 = vpop.f32.mrf.mxu1  ;;  %v1682_v46 = vpop.f32.mrf.mxu3 }
 0x103   : > { %v757_v24 = vadd.f32 %v756_v30, %v727_v28  ;;  %v3127_v28 = vld [vmem:[%s3175_s5] ss:$0 sm:$0xff]  ;;  %v1683_v29 = vadd.f32 %v1682_v46, %v1653_v21 }
 0x105   : > { %v3121_v40 = vadd.f32 %v785_v4, %v757_v24 }
 0x109   : > { %v1655_v51 = vpop.f32.mrf.mxu2  ;;  %v1706_v61 = vpop.f32.mrf.mxu0 }
 0x10a   : > { %v1228_v45 = vpop.f32.mrf.mxu1  ;;  %v1707_v25 = vadd.f32 %v1706_v61, %v1678_v53  ;;  %v1684_v33 = vpop.f32.mrf.mxu3 }
 0x10b   : > { %v1229_v44 = vadd.f32 %v1228_v45, %v1200_v17  ;;  %v1685_v10 = vadd.f32 %v1684_v33, %v1655_v51 }
 0x10d   : > { %v1256_v52 = vadd.f32 %v1229_v44, %v769_v22 }
 0x10f   : > { %v1734_v58 = vadd.f32 %v1707_v25, %v1256_v52 }
 0x111   : > { %v1658_v26 = vpop.f32.mrf.mxu2  ;;  %v1708_v11 = vpop.f32.mrf.mxu0  ;;  %v1762_v22 = vadd.f32 %v3127_v28, %v1734_v58 }
 0x112   : > { %v1230_v9 = vpop.f32.mrf.mxu1  ;;  %v1709_v17 = vadd.f32 %v1708_v11, %v1680_v13  ;;  %v1687_v2 = vpop.f32.mrf.mxu3 }
 0x113   : > { %v1231_v57 = vadd.f32 %v1230_v9, %v1202_v16  ;;  %v1770_v47 = vmax.f32 %v1762_v22, 0.0  ;;  %v1688_v45 = vadd.f32 %v1687_v2, %v1658_v26 }
 0x115   : > { %v1257_v32 = vadd.f32 %v1231_v57, %v771_v41 }
 0x117   : > { %v1735_v38 = vadd.f32 %v1709_v17, %v1257_v32 }
 0x119   : > { %v1763_v3 = vadd.f32 %v3127_v28, %v1735_v38  ;;  %v1660_v34 = vpop.f32.mrf.mxu2  ;;  %v1711_v42 = vpop.f32.mrf.mxu0 }
 0x11a   : > { %v1233_v39 = vpop.f32.mrf.mxu1  ;;  %v1712_v4 = vadd.f32 %v1711_v42, %v1683_v29  ;;  %v1689_v30 = vpop.f32.mrf.mxu3 }
 0x11b   : > { %v1771_v48 = vmax.f32 %v1763_v3, 0.0  ;;  %v1234_v35 = vadd.f32 %v1233_v39, %v1205_v36  ;;  %v1690_v52 = vadd.f32 %v1689_v30, %v1660_v34 }
 0x11d   : > { %v2484_v41 = vpack.c.bf16 %v1771_v48, %v1770_v47  ;;  %v1258_v1 = vadd.f32 %v1234_v35, %v3099_v59 }
 0x11f   : > { %2485 = vst [vmem:[%s3135_s25] sm:$0xff] %v2484_v41   ;;  %v1736_v36 = vadd.f32 %v1712_v4, %v1258_v1 }
 0x121   : > { %v1713_v8 = vpop.f32.mrf.mxu0  ;;  %v1663_v18 = vpop.f32.mrf.mxu2  ;;  %v1764_v7 = vadd.f32 %v3127_v28, %v1736_v36 }
 0x122   : > { %v1235_v5 = vpop.f32.mrf.mxu1  ;;  %v1714_v56 = vadd.f32 %v1713_v8, %v1685_v10  ;;  %v1692_v9 = vpop.f32.mrf.mxu3 }
 0x123   : > { %v1236_v43 = vadd.f32 %v1235_v5, %v1207_v60  ;;  %v1772_v15 = vmax.f32 %v1764_v7, 0.0  ;;  %v1693_v22 = vadd.f32 %v1692_v9, %v1663_v18 }
 0x125   : > { %v1259_v55 = vadd.f32 %v1236_v43, %v3103_v62  ;;  %v1212_v62 = vadd.f32 %v3111_v19, %v3097_v54 }
 0x127   : > { %v1737_v59 = vadd.f32 %v1714_v56, %v1259_v55 }
 0x129   : > { %v1765_v49 = vadd.f32 %v3127_v28, %v1737_v59  ;;  %v1716_v63 = vpop.f32.mrf.mxu0  ;;  %v1665_v51 = vpop.f32.mrf.mxu2 }
 0x12a   : > { %v1238_v50 = vpop.f32.mrf.mxu1  ;;  %v1717_v61 = vadd.f32 %v1716_v63, %v1688_v45  ;;  %v1694_v33 = vpop.f32.mrf.mxu3 }
 0x12b   : > { %v1773_v31 = vmax.f32 %v1765_v49, 0.0  ;;  %v1239_v21 = vadd.f32 %v1238_v50, %v3105_v12  ;;  %v1695_v39 = vadd.f32 %v1694_v33, %v1665_v51 }
 0x12d   : > { %v2489_v27 = vpack.c.bf16 %v1773_v31, %v1772_v15  ;;  %v1260_v24 = vadd.f32 %v1239_v21, %v3107_v14 }
 0x12f   : > { %2501 = vst [vmem:[%s3135_s25 + $0x8] sm:$0xff] %v2489_v27   ;;  %v1738_v53 = vadd.f32 %v1717_v61, %v1260_v24 }
 0x131   : > { %v1718_v46 = vpop.f32.mrf.mxu0  ;;  %v1766_v11 = vadd.f32 %v3127_v28, %v1738_v53  ;;  %v1721_v13 = vpop.f32.mrf.mxu2 }
 0x132   : > { %v1240_v44 = vpop.f32.mrf.mxu1  ;;  %v1719_v12 = vadd.f32 %v1718_v46, %v1690_v52  ;;  %v1722_v38 = vadd.f32 %v1721_v13, %v1693_v22 }
 0x133   : > { %v1241_v16 = vadd.f32 %v1240_v44, %v1212_v62  ;;  %v1774_v57 = vmax.f32 %v1766_v11, 0.0 }
 0x135   : > { %v1261_v25 = vadd.f32 %v1241_v16, %v3113_v6  ;;  %v1217_v6 = vadd.f32 %v3119_v23, %v3109_v37 }
 0x137   : > { %v1739_v14 = vadd.f32 %v1719_v12, %v1261_v25 }
 0x139   : > { %v1767_v26 = vadd.f32 %v3127_v28, %v1739_v14  ;;  %v1723_v3 = vpop.f32.mrf.mxu2 }
 0x13a   : > { %v1243_v58 = vpop.f32.mrf.mxu1  ;;  %v1724_v48 = vadd.f32 %v1723_v3, %v1695_v39 }
 0x13b   : > { %v1775_v54 = vmax.f32 %v1767_v26, 0.0  ;;  %v1244_v19 = vadd.f32 %v1243_v58, %v3115_v0 }
 0x13d   : > { %v2494_v32 = vpack.c.bf16 %v1775_v54, %v1774_v57  ;;  %v1262_v17 = vadd.f32 %v1244_v19, %v3117_v20 }
 0x13f   : > { %2502 = vst [vmem:[%s3135_s25 + $0x10] sm:$0xff] %v2494_v32   ;;  %v1740_v42 = vadd.f32 %v1722_v38, %v1262_v17 }
 0x141   : > { %v1768_v0 = vadd.f32 %v3127_v28, %v1740_v42 }
 0x142   : > { %v1245_v34 = vpop.f32.mrf.mxu1 }
 0x143   : > { %v1246_v47 = vadd.f32 %v1245_v34, %v1217_v6  ;;  %v1776_v1 = vmax.f32 %v1768_v0, 0.0 }
 0x145   : > { %v1263_v35 = vadd.f32 %v1246_v47, %v3121_v40 }
 0x147   : > { %v1741_v41 = vadd.f32 %v1724_v48, %v1263_v35 }
 0x149   : > { %v1769_v20 = vadd.f32 %v3127_v28, %v1741_v41 }
 0x14b   : > { %v1777_v29 = vmax.f32 %v1769_v20, 0.0 }
 0x14d   : > { %v2499_v60 = vpack.c.bf16 %v1777_v29, %v1776_v1 }
 0x14f   : > { %2503 = vst [vmem:[%s3135_s25 + $0x18] sm:$0xff] %v2499_v60  }
 0x150 PF: > { %s16_s23 = sadd.s32 1, %s2568_s23   ;;  %s3177_s21 = smov %s2564_s22 }
 0x151   : > { %p13_p5 = scmp.ge.s32.totalorder %s16_s23, 4   ;;  %s3178_s22 = smov %s3180_s24 }
 0x153   :  { %15 = sbr.rel (!%p13_p5) target bundleno = 2 (0x2), region = 91 }

// kernel: basic_block_forward.3
= control target key start
LH: loop header
LB: loop body
LE: loop exit
PB: predicated region body
PF: predicated region fallthrough
CT: control target
= control target key end

     0   :  { %s2835_s18 = smov 0   ;;  %s2837_s19 = smov 0   ;;  %s3417_s0 = inlined_call_operand.vmem [shape: bf16[2,8,8,128], index: 0, kind: input, shape index: {}]   ;;  %s3418_s1 = inlined_call_operand.vmem [shape: bf16[3,384,128], index: 1, kind: input, shape index: {}]   ;;  %s3419_s2 = inlined_call_operand.vmem [shape: f32[1,128], index: 2, kind: input, shape index: {}]   ;;  %s3420_s3 = inlined_call_operand.vmem [shape: bf16[2,64,128], index: 3, kind: input, shape index: {}]   ;;  %s3421_s4 = inlined_call_operand.vmem [shape: bf16[128,128], index: 4, kind: input, shape index: {}]   ;;  %s3422_s5 = inlined_call_operand.vmem [shape: f32[2,64,128], index: 5, kind: output, shape index: {}]  }
   0x1   :  { %s2839_s20 = smov 0  }
   0x2 LB: > { %s27_s21 = sadd.s32 1, %s2798_s19  ;;  %p2159_p0 = scmp.ge.s32.totalorder %s2802_s20, 1  ;;  %s2802_s20 = sphi %s2839_s20, %s15_s20   ;;  %s2798_s19 = sphi %s2837_s19, %s3428_s19   ;;  %s2794_s18 = sphi %s2835_s18, %s3427_s18  }
   0x3   : > { %p29_p1 = scmp.ge.s32.totalorder %s27_s21, 2  ;;  %p218_p2 = scmp.lt.s32.totalorder %s2802_s20, 3 }
   0x5   : > { %s3430_s21 = smov (%p29_p1, %s27_s21), 0  ;;  %p219_p3 = pnand %p2159_p0, %p218_p2 }
   0x6   : > { %p259_p4 = scmp.lt.s32.totalorder (!%p219_p3), %s2794_s18, 1 }
   0x7   : > { %222 = sbr.rel (%p219_p3) target bundleno = 356 (0x164), region = 40 }
   0xc   : > { %v2642_v0 = vld [vmem:[%s3418_s1 + $0x38] sm:$0xff]  ;;  %v2641_v2 = vld [vmem:[%s3418_s1 + $0x30] sm:$0xff]  ;;  %s3432_s18 = smov (!%p259_p4, %s2794_s18), 1  ;;  %v2804_v3 = vmov 0   ;;  %v2640_v9 = vld [vmem:[%s3418_s1 + $0x28] sm:$0xff]  ;;  %vm386_vm0 = vcmask 1040384  }
   0xd   : > { %v2650_v1 = vld [vmem:[%s3418_s1 + $0x78] sm:$0xff]  ;;  %2738 = vmatpush.bf16.msra.mxu2 %v2642_v0  ;;  %846 = vmatpush.bf16.msra.mxu0 %v2642_v0  ;;  %v417_v4 = vunpack.c.l.b16 %v2804_v3  ;;  %v418_v5 = vunpack.c.h.b16 %v2804_v3  ;;  %v2649_v6 = vld [vmem:[%s3418_s1 + $0x70] sm:$0xff]  ;;  %s2632_s30 = sshll.u32 %s3432_s18, 5  ;;  %v2648_v12 = vld [vmem:[%s3418_s1 + $0x68] sm:$0xff]  ;;  %vm397_vm1 = vcmask 1044480   ;;  %s2634_s29 = sshll.u32 %s3432_s18, 6 }
   0xe   : > { %875 = vmatpush.bf16.msra.mxu1 %v2650_v1  ;;  %2746 = vmatpush.bf16.msra.mxu3 %v2650_v1  ;;  %s263_s8 = scalar_lea.vmem %s3417_s0, %s2632_s30  ;;  %v2639_v24 = vld [vmem:[%s3418_s1 + $0x20] sm:$0xff]  ;;  %vm387_vm2 = vsmask.f32 256  ;;  %vm398_vm3 = vsmask.f32 4352  ;;  %v2638_v40 = vld [vmem:[%s3418_s1 + $0x18] sm:$0xff]  ;;  %s3315_s27 = scalar_lea.vmem %s3420_s3, %s2632_s30 }
   0xf   : > { %v435_v7 = vpack.c.b16 %v417_v4, %v417_v4  ;;  %v436_v8 = vpack.c.b16 %v418_v5, %v418_v5  ;;  %v2876_v10 = vld [vmem:[%s263_s8 + $0x8] sm:$0xff]   ;;  %v2736_v11 = vld [vmem:[%s263_s8 + $0x10] sm:$0xff]   ;;  %v2720_v15 = vld [vmem:[%s263_s8] sm:$0xff]  }
  0x10   : > { %v2726_v13 = vunpack.c.h.b16 %v2876_v10  ;;  %v2729_v14 = vunpack.c.l.b16 %v2736_v11  ;;  %v2730_v16 = vunpack.c.h.b16 %v2736_v11  ;;  %v2721_v17 = vunpack.c.l.b16 %v2720_v15  ;;  %v2882_v18 = vld [vmem:[%s263_s8 + $0x18] sm:$0xff]   ;;  %v2647_v27 = vld [vmem:[%s3418_s1 + $0x60] sm:$0xff]  ;;  %vm2899_vm4 = vmand %vm386_vm0, %vm387_vm2  ;;  %s3371_s8 = scalar_lea.vmem %s3422_s5, %s2634_s29 }
  0x11   : > { %2739 = vmatpush.bf16.msra.mxu2 %v2641_v2  ;;  %847 = vmatpush.bf16.msra.mxu0 %v2641_v2  ;;  %471 = vst [vmem:[#allocation3] sm:$0xf] %v435_v7  ;;  %v2722_v19 = vunpack.c.h.b16 %v2720_v15  ;;  %v2733_v22 = vunpack.c.l.b16 %v2882_v18  ;;  %v2646_v45 = vld [vmem:[%s3418_s1 + $0x58] sm:$0xff]  ;;  %vm2908_vm5 = vmand %vm397_vm1, %vm398_vm3  ;;  %v2725_v53 = vunpack.c.l.b16 %v2876_v10  ;;  %v2637_v58 = vld [vmem:[%s3418_s1 + $0x10] sm:$0xff] }
  0x12   : > { %876 = vmatpush.bf16.msra.mxu1 %v2649_v6  ;;  %2747 = vmatpush.bf16.msra.mxu3 %v2649_v6  ;;  %472 = vst [vmem:[#allocation3 + $0x4] sm:$0x1] %v436_v8  ;;  %v317_v20 = vpack.c.b16 %v2726_v13, %v2726_v13  ;;  %v318_v21 = vpack.c.b16 %v2729_v14, %v2729_v14  ;;  %v2645_v0 = vld [vmem:[%s3418_s1 + $0x50] sm:$0xff]  ;;  %v2636_v13 = vld [vmem:[%s3418_s1 + $0x8] sm:$0xff] }
  0x13   : > { %489 = vst [vmem:[#allocation3 + $0x48] sm:$0xf] %v435_v7  ;;  %v319_v23 = vpack.c.b16 %v2730_v16, %v2730_v16  ;;  %v314_v25 = vpack.c.b16 %v2721_v17, %v2721_v17  ;;  %v2888_v26 = vpack.c.b16 %v2722_v19, %v2722_v19  ;;  %v320_v34 = vpack.c.b16 %v2733_v22, %v2733_v22  ;;  %v2644_v19 = vld [vmem:[%s3418_s1 + $0x48] sm:$0xff] }
  0x14   : > { %490 = vst [vmem:[#allocation3 + $0x4c] sm:$0x1] %v436_v8  ;;  %v344_v28 = vshrl.u32 %v317_v20, 16  ;;  %v347_v29 = vshll.u32 %v317_v20, 16  ;;  %v351_v30 = vshrl.u32 %v318_v21, 16  ;;  %v354_v31 = vshll.u32 %v318_v21, 16 }
  0x15   : > { %2740 = vmatpush.bf16.msra.mxu2 %v2640_v9  ;;  %848 = vmatpush.bf16.msra.mxu0 %v2640_v9  ;;  %v323_v32 = vshrl.u32 %v314_v25, 16  ;;  %v326_v33 = vshll.u32 %v314_v25, 16  ;;  %v358_v35 = vshrl.u32 %v319_v23, 16  ;;  %v361_v38 = vshll.u32 %v319_v23, 16 }
  0x16   : > { %877 = vmatpush.bf16.msra.mxu1 %v2648_v12  ;;  %2748 = vmatpush.bf16.msra.mxu3 %v2648_v12  ;;  %v346_v36 = vrot.slane %v344_v28, 7  ;;  %v353_v37 = vrot.slane %v351_v30, 7  ;;  %v330_v39 = vshrl.u32 %v2888_v26, 16  ;;  %v365_v44 = vshrl.u32 %v320_v34, 16 }
  0x17   : > { %v325_v42 = vrot.slane %v323_v32, 7  ;;  %v360_v43 = vrot.slane %v358_v35, 7  ;;  %v368_v49 = vshll.u32 %v320_v34, 16  ;;  %v333_v57 = vshll.u32 %v2888_v26, 16  ;;  %v2658_v35 = vld [vmem:[%s3418_s1 + $0xb8] sm:$0xff] }
  0x18   : > { %v349_v46 = vor.u32 %v347_v29, %v346_v36  ;;  %v356_v47 = vor.u32 %v354_v31, %v353_v37  ;;  %v367_v52 = vrot.slane %v365_v44, 7  ;;  %v332_v56 = vrot.slane %v330_v39, 7  ;;  %v2927_v62 = vld [vmem:[#allocation3] sm:$0xf] }
  0x19   : > { %2741 = vmatpush.bf16.msra.mxu2 %v2639_v24  ;;  %849 = vmatpush.bf16.msra.mxu0 %v2639_v24  ;;  %v328_v50 = vor.u32 %v326_v33, %v325_v42  ;;  %v363_v51 = vor.u32 %v361_v38, %v360_v43  ;;  %v495_v6 = vld [vmem:[#allocation3 + $0x4] sm:$0x1]  ;;  %v316_v8 = vpack.c.b16 %v2725_v53, %v2725_v53  ;;  %v526_v12 = vunpack.c.l.b16 %v2927_v62  ;;  %v2680_v62 = vld [vmem:[%s3418_s1 + $0x168] sm:$0xff] }
  0x1a   : > { %878 = vmatpush.bf16.msra.mxu1 %v2647_v27  ;;  %2749 = vmatpush.bf16.msra.mxu3 %v2647_v27  ;;  %v392_v54 = vsel %vm2899_vm4, 0, %v349_v46  ;;  %v393_v55 = vsel %vm2899_vm4, 0, %v356_v47  ;;  %v370_v63 = vor.u32 %v368_v49, %v367_v52  ;;  %v527_v20 = vunpack.c.l.b16 %v495_v6  ;;  %v2635_v31 = vld [vmem:[%s3418_s1] sm:$0xff]  ;;  %v2682_v46 = vld [vmem:[%s3418_s1 + $0x178] sm:$0xff]  ;;  %v2681_v6 = vld [vmem:[%s3418_s1 + $0x170] sm:$0xff] }
  0x1b   : > { %v403_v59 = vsel %vm2908_vm5, %v392_v54, 0  ;;  %v404_v60 = vsel %vm2908_vm5, %v393_v55, 0  ;;  %v389_v61 = vsel %vm2899_vm4, 0, %v328_v50  ;;  %v394_v7 = vsel %vm2899_vm4, 0, %v363_v51  ;;  %v2643_v36 = vld [vmem:[%s3418_s1 + $0x40] sm:$0xff]  ;;  %v2657_v54 = vld [vmem:[%s3418_s1 + $0xb0] sm:$0xff] }
  0x1c   : > { %v425_v1 = vunpack.c.l.b16 %v403_v59  ;;  %v426_v2 = vunpack.c.h.b16 %v403_v59  ;;  %v427_v3 = vunpack.c.l.b16 %v404_v60  ;;  %v428_v4 = vunpack.c.h.b16 %v404_v60  ;;  %v2673_v60 = vld [vmem:[%s3418_s1 + $0x130] sm:$0xff] }
  0x1d   : > { %2742 = vmatpush.bf16.msra.mxu2 %v2638_v40  ;;  %850 = vmatpush.bf16.msra.mxu0 %v2638_v40  ;;  %v400_v5 = vsel %vm2908_vm5, %v389_v61, 0  ;;  %v395_v17 = vsel %vm2899_vm4, 0, %v370_v63  ;;  %v405_v21 = vsel %vm2908_vm5, %v394_v7, 0  ;;  %v335_v23 = vor.u32 %v333_v57, %v332_v56  ;;  %v2674_v40 = vld [vmem:[%s3418_s1 + $0x138] sm:$0xff] }
  0x1e   : > { %879 = vmatpush.bf16.msra.mxu1 %v2646_v45  ;;  %2750 = vmatpush.bf16.msra.mxu3 %v2646_v45  ;;  %v443_v9 = vpack.c.b16 %v425_v1, %v425_v1  ;;  %v444_v10 = vpack.c.b16 %v426_v2, %v426_v2  ;;  %v445_v11 = vpack.c.b16 %v427_v3, %v427_v3  ;;  %v419_v15 = vunpack.c.l.b16 %v400_v5  ;;  %v2666_v45 = vld [vmem:[%s3418_s1 + $0xf8] sm:$0xff]  ;;  %v2665_v1 = vld [vmem:[%s3418_s1 + $0xf0] sm:$0xff] }
  0x1f   : > { %v446_v14 = vpack.c.b16 %v428_v4, %v428_v4  ;;  %v420_v16 = vunpack.c.h.b16 %v400_v5  ;;  %v406_v22 = vsel %vm2908_vm5, %v395_v17, 0  ;;  %v429_v26 = vunpack.c.l.b16 %v405_v21 }
  0x20   : > { %479 = vst [vmem:[#allocation3 + $0x20] sm:$0xf] %v443_v9  ;;  %v437_v24 = vpack.c.b16 %v419_v15, %v419_v15  ;;  %v430_v27 = vunpack.c.h.b16 %v405_v21  ;;  %v431_v28 = vunpack.c.l.b16 %v406_v22  ;;  %v432_v29 = vunpack.c.h.b16 %v406_v22  ;;  %v2672_v22 = vld [vmem:[%s3418_s1 + $0x128] sm:$0xff] }
  0x21   : > { %2743 = vmatpush.bf16.msra.mxu2 %v2637_v58  ;;  %851 = vmatpush.bf16.msra.mxu0 %v2637_v58  ;;  %480 = vst [vmem:[#allocation3 + $0x24] sm:$0x1] %v444_v10  ;;  %v438_v25 = vpack.c.b16 %v420_v16, %v420_v16  ;;  %v337_v30 = vshrl.u32 %v316_v8, 16  ;;  %v447_v32 = vpack.c.b16 %v429_v26, %v429_v26  ;;  %v340_v33 = vshll.u32 %v316_v8, 16  ;;  %v2656_v10 = vld [vmem:[%s3418_s1 + $0xa8] sm:$0xff] }
  0x22   : > { %880 = vmatpush.bf16.msra.mxu1 %v2645_v0  ;;  %2751 = vmatpush.bf16.msra.mxu3 %v2645_v0  ;;  %481 = vst [vmem:[#allocation3 + $0x28] sm:$0xf] %v445_v11  ;;  %v390_v34 = vsel %vm2899_vm4, 0, %v335_v23  ;;  %v2962_v37 = vpack.c.b16 %v527_v20, %v526_v12  ;;  %v448_v38 = vpack.c.b16 %v430_v27, %v430_v27  ;;  %v2664_v26 = vld [vmem:[%s3418_s1 + $0xe8] sm:$0xff] }
  0x23   : > { %482 = vst [vmem:[#allocation3 + $0x2c] sm:$0x1] %v446_v14  ;;  %v449_v39 = vpack.c.b16 %v431_v28, %v431_v28  ;;  %v450_v42 = vpack.c.b16 %v432_v29, %v432_v29  ;;  %v339_v43 = vrot.slane %v337_v30, 7  ;;  %v401_v44 = vsel %vm2908_vm5, %v390_v34, 0  ;;  %v2655_v34 = vld [vmem:[%s3418_s1 + $0xa0] sm:$0xff] }
  0x24   : > { %473 = vst [vmem:[#allocation3 + $0x8] sm:$0xf] %v437_v24  ;;  %v421_v47 = vunpack.c.l.b16 %v401_v44  ;;  %v422_v49 = vunpack.c.h.b16 %v401_v44  ;;  %v553_v55 = vshll.u32 %v2962_v37, 16  ;;  %v551_v14 = vshrl.u32 %v2962_v37, 16  ;;  %v2671_v44 = vld [vmem:[%s3418_s1 + $0x120] sm:$0xff] }
  0x25   : > { %2744 = vmatpush.bf16.msra.mxu2 %v2636_v13  ;;  %852 = vmatpush.bf16.msra.mxu0 %v2636_v13  ;;  %474 = vst [vmem:[#allocation3 + $0xc] sm:$0x1] %v438_v25  ;;  %v342_v51 = vor.u32 %v340_v33, %v339_v43 }
  0x26   : > { %881 = vmatpush.bf16.msra.mxu1 %v2644_v19  ;;  %2752 = vmatpush.bf16.msra.mxu3 %v2644_v19  ;;  %483 = vst [vmem:[#allocation3 + $0x30] sm:$0xf] %v447_v32  ;;  %v439_v56 = vpack.c.b16 %v421_v47, %v421_v47  ;;  %v440_v57 = vpack.c.b16 %v422_v49, %v422_v49  ;;  %v555_v15 = vrot.slane %v553_v55, 1  ;;  %v2663_v47 = vld [vmem:[%s3418_s1 + $0xe0] sm:$0xff] }
  0x27   : > { %v502_v50 = vld [vmem:[#allocation3 + $0x20] sm:$0xf]  ;;  %484 = vst [vmem:[#allocation3 + $0x34] sm:$0x1] %v448_v38  ;;  %v391_v61 = vsel %vm2899_vm4, 0, %v342_v51 }
  0x28   : > { %v503_v52 = vld [vmem:[#allocation3 + $0x24] sm:$0x1]  ;;  %v534_v53 = vunpack.c.l.b16 %v502_v50  ;;  %485 = vst [vmem:[#allocation3 + $0x38] sm:$0xf] %v449_v39  ;;  %v402_v2 = vsel %vm2908_vm5, %v391_v61, 0 }
  0x29   : > { %2745 = vmatpush.bf16.msra.mxu2 %v2635_v31  ;;  %853 = vmatpush.bf16.msra.mxu0 %v2635_v31  ;;  %v504_v58 = vld [vmem:[#allocation3 + $0x28] sm:$0xf]  ;;  %v535_v59 = vunpack.c.l.b16 %v503_v52  ;;  %486 = vst [vmem:[#allocation3 + $0x3c] sm:$0x1] %v450_v42  ;;  %v423_v7 = vunpack.c.l.b16 %v402_v2  ;;  %v424_v8 = vunpack.c.h.b16 %v402_v2  ;;  %v2679_v55 = vld [vmem:[%s3418_s1 + $0x160] sm:$0xff]  ;;  %v2670_v2 = vld [vmem:[%s3418_s1 + $0x118] sm:$0xff] }
  0x2a   : > { %882 = vmatpush.bf16.msra.mxu1 %v2643_v36  ;;  %2753 = vmatpush.bf16.msra.mxu3 %v2643_v36  ;;  %v505_v63 = vld [vmem:[#allocation3 + $0x2c] sm:$0x1]  ;;  %v536_v0 = vunpack.c.l.b16 %v504_v58  ;;  %475 = vst [vmem:[#allocation3 + $0x10] sm:$0xf] %v439_v56 }
  0x2b   : > { %v537_v3 = vunpack.c.l.b16 %v505_v63  ;;  %v2989_v4 = vpack.c.b16 %v535_v59, %v534_v53  ;;  %v496_v5 = vld [vmem:[#allocation3 + $0x8] sm:$0xf]  ;;  %476 = vst [vmem:[#allocation3 + $0x14] sm:$0x1] %v440_v57  ;;  %v441_v27 = vpack.c.b16 %v423_v7, %v423_v7  ;;  %v442_v28 = vpack.c.b16 %v424_v8, %v424_v8  ;;  %v2654_v57 = vld [vmem:[%s3418_s1 + $0x98] sm:$0xff] }
  0x2c   : > { %v684_v9 = vpack.c.b16 %v536_v0, %v534_v53  ;;  %v497_v11 = vld [vmem:[#allocation3 + $0xc] sm:$0x1]  ;;  %v528_v13 = vunpack.c.l.b16 %v496_v5  ;;  %v2662_v7 = vld [vmem:[%s3418_s1 + $0xd8] sm:$0xff] }
  0x2d   : > { %904 = vmatpush.bf16.msrb.mxu2 %v2658_v35  ;;  %1327 = vmatpush.bf16.msrb.mxu0 %v2674_v40  ;;  %v2998_v16 = vpack.c.b16 %v537_v3, %v536_v0  ;;  %v529_v17 = vunpack.c.l.b16 %v497_v11  ;;  %v579_v19 = vshrl.u32 %v2989_v4, 16  ;;  %v581_v20 = vshll.u32 %v2989_v4, 16  ;;  %v3002_v21 = vld [vmem:[#allocation3 + $0x30] sm:$0xf]  ;;  %477 = vst [vmem:[#allocation3 + $0x18] sm:$0xf] %v441_v27 }
  0x2e   : > { %1298 = vmatpush.bf16.msrb.mxu3 %v2666_v45  ;;  %1356 = vmatpush.bf16.msrb.mxu1 %v2682_v46  ;;  %v678_v23 = vpack.c.b16 %v528_v13, %v526_v12  ;;  %v507_v24 = vld [vmem:[#allocation3 + $0x34] sm:$0x1]  ;;  %v538_v25 = vunpack.c.l.b16 %v3002_v21  ;;  %v556_v12 = vor.u32 %v555_v15, %v551_v14  ;;  %478 = vst [vmem:[#allocation3 + $0x1c] sm:$0x1] %v442_v28  ;;  %v2263_v61 = vld [vmem:[#allocation3 + $0xc] sm:$0x1] }
  0x2f   : > { %864 = vmatmul.bf16.vlgmr.msra.gmra.mxu2 %v684_v9  ;;  %v3013_v29 = vpack.c.b16 %v529_v17, %v528_v13  ;;  %v583_v30 = vrot.slane %v581_v20, 1  ;;  %v586_v31 = vshrl.u32 %v2998_v16, 16  ;;  %v588_v32 = vshll.u32 %v2998_v16, 16  ;;  %v3017_v33 = vld [vmem:[#allocation3 + $0x38] sm:$0xf]  ;;  %v2653_v11 = vld [vmem:[%s3418_s1 + $0x90] sm:$0xff] }
  0x30   : > { %854 = vmatmul.bf16.vlgmr.msra.gmra.mxu0 %v678_v23  ;;  %v509_v35 = vld [vmem:[#allocation3 + $0x3c] sm:$0x1]  ;;  %v539_v36 = vunpack.c.l.b16 %v507_v24  ;;  %v540_v38 = vunpack.c.l.b16 %v3017_v33  ;;  %v614_v0 = vunpack.c.l.b16 %v556_v12  ;;  %v978_v17 = vunpack.c.l.b16 %v2263_v61  ;;  %v2652_v21 = vld [vmem:[%s3418_s1 + $0x88] sm:$0xff] }
  0x31   : > { %905 = vmatpush.bf16.msrb.mxu2 %v2657_v54  ;;  %1328 = vmatpush.bf16.msrb.mxu0 %v2673_v60  ;;  %v558_v39 = vshrl.u32 %v3013_v29, 16  ;;  %v560_v40 = vshll.u32 %v3013_v29, 16  ;;  %v584_v42 = vor.u32 %v583_v30, %v579_v19  ;;  %v590_v43 = vrot.slane %v588_v32, 1  ;;  %v498_v49 = vld [vmem:[#allocation3 + $0x10] sm:$0xf] }
  0x32   : > { %1299 = vmatpush.bf16.msrb.mxu3 %v2665_v1  ;;  %1357 = vmatpush.bf16.msrb.mxu1 %v2681_v6  ;;  %v541_v45 = vunpack.c.l.b16 %v509_v35  ;;  %v3033_v46 = vpack.c.b16 %v539_v36, %v538_v25  ;;  %v499_v50 = vld [vmem:[#allocation3 + $0x14] sm:$0x1]  ;;  %v530_v54 = vunpack.c.l.b16 %v498_v49  ;;  %v3047_v60 = vld [vmem:[#allocation3 + $0x8] sm:$0xf]  ;;  %v3059_v8 = vld [vmem:[#allocation3 + $0x10] sm:$0xf]  ;;  %v687_v33 = vpack.c.b16 %v540_v38, %v538_v25 }
  0x33   : > { %v562_v51 = vrot.slane %v560_v40, 1  ;;  %v591_v52 = vor.u32 %v590_v43, %v586_v31  ;;  %v622_v53 = vunpack.c.l.b16 %v584_v42  ;;  %v531_v58 = vunpack.c.l.b16 %v499_v50  ;;  %v2265_v14 = vld [vmem:[#allocation3 + $0x14] sm:$0x1]  ;;  %v2660_v49 = vld [vmem:[%s3418_s1 + $0xc8] sm:$0xff] }
  0x34   : > { %v3041_v56 = vpack.c.b16 %v541_v45, %v540_v38  ;;  %v595_v59 = vshll.u32 %v3033_v46, 16  ;;  %v593_v5 = vshrl.u32 %v3033_v46, 16  ;;  %v500_v13 = vld [vmem:[#allocation3 + $0x18] sm:$0xf]  ;;  %v977_v15 = vunpack.c.l.b16 %v3047_v60  ;;  %v2669_v31 = vld [vmem:[%s3418_s1 + $0x110] sm:$0xff]  ;;  %v2668_v45 = vld [vmem:[%s3418_s1 + $0x108] sm:$0xff] }
  0x35   : > { %906 = vmatpush.bf16.msrb.mxu2 %v2656_v10  ;;  %1329 = vmatpush.bf16.msrb.mxu0 %v2672_v22  ;;  %v563_v63 = vor.u32 %v562_v51, %v558_v39  ;;  %v624_v1 = vunpack.c.l.b16 %v591_v52  ;;  %v3052_v3 = vpack.c.b16 %v531_v58, %v530_v54  ;;  %v501_v19 = vld [vmem:[#allocation3 + $0x1c] sm:$0x1]  ;;  %v532_v20 = vunpack.c.l.b16 %v500_v13  ;;  %v2659_v13 = vld [vmem:[%s3418_s1 + $0xc0] sm:$0xff] }
  0x36   : > { %1300 = vmatpush.bf16.msrb.mxu3 %v2664_v26  ;;  %1358 = vmatpush.bf16.msrb.mxu1 %v2680_v62  ;;  %v602_v6 = vshll.u32 %v3041_v56, 16  ;;  %v597_v23 = vrot.slane %v595_v59, 1  ;;  %v600_v24 = vshrl.u32 %v3041_v56, 16  ;;  %v2678_v26 = vld [vmem:[%s3418_s1 + $0x158] sm:$0xff]  ;;  %v533_v28 = vunpack.c.l.b16 %v501_v19  ;;  %v2661_v62 = vld [vmem:[%s3418_s1 + $0xd0] sm:$0xff] }
  0x37   : > { %v616_v9 = vunpack.c.l.b16 %v563_v63  ;;  %v685_v10 = vpack.c.b16 %v624_v1, %v622_v53  ;;  %v567_v22 = vshll.u32 %v3052_v3, 16  ;;  %v979_v32 = vunpack.c.l.b16 %v3059_v8  ;;  %v2686_v8 = vld [vmem:[%s3418_s1 + $0x198] sm:$0xff] }
  0x38   : > { %v604_v30 = vrot.slane %v602_v6, 1  ;;  %v980_v12 = vunpack.c.l.b16 %v2265_v14  ;;  %v565_v35 = vshrl.u32 %v3052_v3, 16  ;;  %v3084_v39 = vpack.c.b16 %v978_v17, %v977_v15  ;;  %v2676_v6 = vld [vmem:[%s3418_s1 + $0x148] sm:$0xff]  ;;  %v2690_v14 = vld [vmem:[%s3418_s1 + $0x1b8] sm:$0xff] }
  0x39   : > { %907 = vmatpush.bf16.msrb.mxu2 %v2655_v34  ;;  %1330 = vmatpush.bf16.msrb.mxu0 %v2671_v44  ;;  %v679_v27 = vpack.c.b16 %v616_v9, %v614_v0  ;;  %v3079_v34 = vpack.c.b16 %v533_v28, %v532_v20  ;;  %v569_v36 = vrot.slane %v567_v22, 1  ;;  %v681_v25 = vpack.c.b16 %v532_v20, %v530_v54  ;;  %v2651_v54 = vld [vmem:[%s3418_s1 + $0x80] sm:$0xff]  ;;  %v2267_v0 = vld [vmem:[#allocation3 + $0x1c] sm:$0x1] }
  0x3a   : > { %1301 = vmatpush.bf16.msrb.mxu3 %v2663_v47  ;;  %1359 = vmatpush.bf16.msrb.mxu1 %v2679_v55  ;;  %v3091_v38 = vpack.c.b16 %v980_v12, %v979_v32  ;;  %v598_v43 = vor.u32 %v597_v23, %v593_v5  ;;  %v605_v44 = vor.u32 %v604_v30, %v600_v24  ;;  %v2677_v47 = vld [vmem:[%s3418_s1 + $0x150] sm:$0xff]  ;;  %v1004_v50 = vshll.u32 %v3084_v39, 16  ;;  %v2667_v55 = vld [vmem:[%s3418_s1 + $0x100] sm:$0xff]  ;;  %v2698_v20 = vld [vmem:[%s3418_s1 + $0x1f8] sm:$0xff] }
  0x3b   : > { %893 = vmatmul.bf16.vlgmr.msra.gmra.mxu3 %v685_v10  ;;  %883 = vmatmul.bf16.vlgmr.msra.gmra.mxu1 %v679_v27  ;;  %v572_v40 = vshrl.u32 %v3079_v34, 16  ;;  %v574_v42 = vshll.u32 %v3079_v34, 16  ;;  %v570_v52 = vor.u32 %v569_v36, %v565_v35  ;;  %v1002_v58 = vshrl.u32 %v3084_v39, 16  ;;  %v2269_v9 = vld [vmem:[#allocation3 + $0x24] sm:$0x1]  ;;  %v2689_v12 = vld [vmem:[%s3418_s1 + $0x1b0] sm:$0xff] }
  0x3c   : > { %v1011_v51 = vshll.u32 %v3091_v38, 16  ;;  %v1006_v59 = vrot.slane %v1004_v50, 1  ;;  %v1009_v61 = vshrl.u32 %v3091_v38, 16  ;;  %v628_v5 = vunpack.c.l.b16 %v605_v44  ;;  %v2675_v30 = vld [vmem:[%s3418_s1 + $0x140] sm:$0xff]  ;;  %v2718_v35 = vld [vmem:[%s3421_s4 + $0x38] sm:$0xff]  ;;  %v2705_v44 = vld [vmem:[%s3418_s1 + $0x230] sm:$0xff] }
  0x3d   : > { %908 = vmatpush.bf16.msrb.mxu2 %v2654_v57  ;;  %1331 = vmatpush.bf16.msrb.mxu0 %v2670_v2  ;;  %v576_v53 = vrot.slane %v574_v42, 1  ;;  %v3112_v57 = vld [vmem:[#allocation3 + $0x18] sm:$0xf]  ;;  %v626_v2 = vunpack.c.l.b16 %v598_v43  ;;  %v606_v10 = vrot.slane %v2962_v37, 1  ;;  %v618_v17 = vunpack.c.l.b16 %v570_v52  ;;  %v2688_v50 = vld [vmem:[%s3418_s1 + $0x1a8] sm:$0xff] }
  0x3e   : > { %1302 = vmatpush.bf16.msrb.mxu3 %v2662_v7  ;;  %1360 = vmatpush.bf16.msrb.mxu1 %v2678_v26  ;;  %v1013_v63 = vrot.slane %v1011_v51, 1  ;;  %v3119_v7 = vld [vmem:[#allocation3 + $0x20] sm:$0xf]  ;;  %v2706_v37 = vld [vmem:[%s3418_s1 + $0x238] sm:$0xff]  ;;  %v982_v22 = vunpack.c.l.b16 %v2267_v0  ;;  %v1007_v23 = vor.u32 %v1006_v59, %v1002_v58  ;;  %v984_v27 = vunpack.c.l.b16 %v2269_v9  ;;  %v2696_v51 = vld [vmem:[%s3418_s1 + $0x1e8] sm:$0xff] }
  0x3f   : > { %869 = vmatmul.bf16.gmra.mxu2 %v687_v33  ;;  %v577_v1 = vor.u32 %v576_v53, %v572_v40  ;;  %v983_v26 = vunpack.c.l.b16 %v3119_v7  ;;  %v688_v28 = vpack.c.b16 %v628_v5, %v626_v2  ;;  %v615_v33 = vunpack.c.l.b16 %v606_v10  ;;  %v2271_v0 = vld [vmem:[#allocation3 + $0x2c] sm:$0x1] }
  0x40   : > { %859 = vmatmul.bf16.gmra.mxu0 %v681_v25  ;;  %v1014_v24 = vor.u32 %v1013_v63, %v1009_v61  ;;  %v1065_v40 = vunpack.c.l.b16 %v1007_v23  ;;  %v2717_v61 = vld [vmem:[%s3421_s4 + $0x30] sm:$0xff]  ;;  %v3175_v63 = vld [vmem:[#allocation3 + $0x28] sm:$0xf]  ;;  %v986_v23 = vunpack.c.l.b16 %v2271_v0  ;;  %v2275_v0 = vld [vmem:[#allocation3 + $0x3c] sm:$0x1] }
  0x41   : > { %909 = vmatpush.bf16.msrb.mxu2 %v2653_v11  ;;  %1332 = vmatpush.bf16.msrb.mxu0 %v2669_v31  ;;  %v607_v11 = vrot.slane %v3013_v29, 1  ;;  %v620_v19 = vunpack.c.l.b16 %v577_v1  ;;  %v981_v29 = vunpack.c.l.b16 %v3112_v57  ;;  %v2734_v31 = vunpack.c.h.b16 %v2882_v18  ;;  %v2704_v5 = vld [vmem:[%s3418_s1 + $0x228] sm:$0xff] }
  0x42   : > { %1303 = vmatpush.bf16.msrb.mxu3 %v2661_v62  ;;  %1361 = vmatpush.bf16.msrb.mxu1 %v2677_v47  ;;  %v1067_v42 = vunpack.c.l.b16 %v1014_v24  ;;  %v3156_v43 = vpack.c.b16 %v984_v27, %v983_v26  ;;  %v2716_v10 = vld [vmem:[%s3421_s4 + $0x28] sm:$0xff] }
  0x43   : > { %v617_v62 = vunpack.c.l.b16 %v607_v11  ;;  %v682_v36 = vpack.c.b16 %v620_v19, %v618_v17  ;;  %v3152_v18 = vpack.c.b16 %v982_v22, %v981_v29  ;;  %v321_v25 = vpack.c.b16 %v2734_v31, %v2734_v31  ;;  %v3190_v11 = vld [vmem:[#allocation3 + $0x30] sm:$0xf]  ;;  %v2684_v57 = vld [vmem:[%s3418_s1 + $0x188] sm:$0xff] }
  0x44   : > { %v1131_v52 = vpack.c.b16 %v1067_v42, %v1065_v40  ;;  %v1025_v53 = vshll.u32 %v3156_v43, 16  ;;  %v1023_v2 = vshrl.u32 %v3156_v43, 16  ;;  %v609_v19 = vrot.slane %v3079_v34, 1  ;;  %v2692_v7 = vld [vmem:[%s3418_s1 + $0x1c8] sm:$0xff] }
  0x45   : > { %910 = vmatpush.bf16.msrb.mxu2 %v2652_v21  ;;  %1333 = vmatpush.bf16.msrb.mxu0 %v2668_v45  ;;  %v2697_v21 = vld [vmem:[%s3418_s1 + $0x1f0] sm:$0xff]  ;;  %v680_v45 = vpack.c.b16 %v617_v62, %v615_v33  ;;  %v372_v47 = vshrl.u32 %v321_v25, 16  ;;  %v1016_v59 = vshrl.u32 %v3152_v18, 16  ;;  %v985_v22 = vunpack.c.l.b16 %v3175_v63 }
  0x46   : > { %1304 = vmatpush.bf16.msrb.mxu3 %v2660_v49  ;;  %1362 = vmatpush.bf16.msrb.mxu1 %v2676_v6  ;;  %v1018_v49 = vshll.u32 %v3152_v18, 16  ;;  %v375_v6 = vshll.u32 %v321_v25, 16  ;;  %v1027_v9 = vrot.slane %v1025_v53, 1  ;;  %v987_v24 = vunpack.c.l.b16 %v3190_v11  ;;  %v2693_v53 = vld [vmem:[%s3418_s1 + $0x1d0] sm:$0xff] }
  0x47   : > { %v374_v58 = vrot.slane %v372_v47, 7  ;;  %v1130_v34 = vpack.c.b16 %v979_v32, %v977_v15  ;;  %v3206_v41 = vpack.c.b16 %v986_v23, %v985_v22  ;;  %v2694_v15 = vld [vmem:[%s3418_s1 + $0x1d8] sm:$0xff]  ;;  %v2703_v32 = vld [vmem:[%s3418_s1 + $0x220] sm:$0xff] }
  0x48   : > { %v1020_v1 = vrot.slane %v1018_v49, 1  ;;  %v1028_v31 = vor.u32 %v1027_v9, %v1023_v2  ;;  %v1059_v49 = vrot.slane %v3152_v18, 1  ;;  %v610_v2 = vrot.slane %v2989_v4, 1 }
  0x49   : > { %911 = vmatpush.bf16.msrb.mxu2 %v2651_v54  ;;  %1334 = vmatpush.bf16.msrb.mxu0 %v2667_v55  ;;  %v1057_v54 = vrot.slane %v3084_v39, 1  ;;  %v1058_v55 = vrot.slane %v3091_v38, 1  ;;  %v2687_v39 = vld [vmem:[%s3418_s1 + $0x1a0] sm:$0xff]  ;;  %v377_v17 = vor.u32 %v375_v6, %v374_v58  ;;  %v1133_v4 = vpack.c.b16 %v983_v26, %v981_v29  ;;  %v2701_v29 = vld [vmem:[%s3418_s1 + $0x210] sm:$0xff] }
  0x4a   : > { %1305 = vmatpush.bf16.msrb.mxu3 %v2659_v13  ;;  %1363 = vmatpush.bf16.msrb.mxu1 %v2675_v30  ;;  %v2695_v38 = vld [vmem:[%s3418_s1 + $0x1e0] sm:$0xff]  ;;  %v2273_v13 = vld [vmem:[#allocation3 + $0x34] sm:$0x1]  ;;  %v1021_v30 = vor.u32 %v1020_v1, %v1016_v59  ;;  %v1071_v60 = vunpack.c.l.b16 %v1028_v31  ;;  %v2714_v59 = vld [vmem:[%s3421_s4 + $0x18] sm:$0xff] }
  0x4b   : > { %898 = vmatmul.bf16.gmra.mxu3 %v688_v28  ;;  %888 = vmatmul.bf16.gmra.mxu1 %v682_v36  ;;  %v988_v27 = vunpack.c.l.b16 %v2273_v13  ;;  %v396_v28 = vsel %vm2899_vm4, 0, %v377_v17  ;;  %v2683_v31 = vld [vmem:[%s3418_s1 + $0x180] sm:$0xff] }
  0x4c   : > { %v1069_v40 = vunpack.c.l.b16 %v1021_v30 }
  0x4d   : > { %1766 = vmatpush.bf16.msra.mxu2 %v2690_v14  ;;  %1824 = vmatpush.bf16.msra.mxu0 %v2706_v37  ;;  %v608_v14 = vrot.slane %v3052_v3, 1  ;;  %v1068_v37 = vunpack.c.l.b16 %v1058_v55  ;;  %v407_v3 = vsel %vm2908_vm5, %v396_v28, 0 }
  0x4e   : > { %1795 = vmatpush.bf16.msra.mxu3 %v2698_v20  ;;  %1993 = vmatpush.bf16.msra.mxu1 %v2718_v35  ;;  %v1066_v20 = vunpack.c.l.b16 %v1057_v54  ;;  %v433_v33 = vunpack.c.l.b16 %v407_v3  ;;  %v434_v62 = vunpack.c.h.b16 %v407_v3  ;;  %v621_v35 = vunpack.c.l.b16 %v609_v19  ;;  %v2713_v3 = vld [vmem:[%s3421_s4 + $0x10] sm:$0xff] }
  0x4f   : > { %912 = vmatmul.bf16.vlgmr.msrb.gmra.mxu2 %v680_v45  ;;  %v1134_v47 = vpack.c.b16 %v1071_v60, %v1069_v40  ;;  %v1030_v54 = vshrl.u32 %v3206_v41, 16 }
  0x50   : > { %1335 = vmatmul.bf16.vlgmr.msrb.gmra.mxu0 %v1131_v52  ;;  %v1132_v36 = vpack.c.b16 %v1068_v37, %v1066_v20  ;;  %v451_v48 = vpack.c.b16 %v433_v33, %v433_v33  ;;  %v452_v25 = vpack.c.b16 %v434_v62, %v434_v62  ;;  %v2685_v52 = vld [vmem:[%s3418_s1 + $0x190] sm:$0xff]  ;;  %v623_v20 = vunpack.c.l.b16 %v610_v2 }
  0x51   : > { %1767 = vmatpush.bf16.msra.mxu2 %v2689_v12  ;;  %1825 = vmatpush.bf16.msra.mxu0 %v2705_v44  ;;  %v619_v12 = vunpack.c.l.b16 %v608_v14  ;;  %v1032_v44 = vshll.u32 %v3206_v41, 16  ;;  %v990_v14 = vunpack.c.l.b16 %v2275_v0 }
  0x52   : > { %1796 = vmatpush.bf16.msra.mxu3 %v2697_v21  ;;  %1994 = vmatpush.bf16.msra.mxu1 %v2717_v61  ;;  %v3210_v21 = vpack.c.b16 %v988_v27, %v987_v24  ;;  %487 = vst [vmem:[#allocation3 + $0x40] sm:$0xf] %v451_v48  ;;  %v3242_v61 = vld [vmem:[#allocation3 + $0x38] sm:$0xf] }
  0x53   : > { %v683_v42 = vpack.c.b16 %v621_v35, %v619_v12  ;;  %488 = vst [vmem:[#allocation3 + $0x44] sm:$0x1] %v452_v25  ;;  %v1034_v55 = vrot.slane %v1032_v44, 1  ;;  %v989_v13 = vunpack.c.l.b16 %v3242_v61  ;;  %v2691_v12 = vld [vmem:[%s3418_s1 + $0x1c0] sm:$0xff]  ;;  %v2700_v35 = vld [vmem:[%s3418_s1 + $0x208] sm:$0xff] }
  0x54   : > { %v1039_v45 = vshll.u32 %v3210_v21, 16  ;;  %v1037_v58 = vshrl.u32 %v3210_v21, 16  ;;  %v1062_v48 = vrot.slane %v3210_v21, 1  ;;  %v2712_v25 = vld [vmem:[%s3421_s4 + $0x8] sm:$0xff]  ;;  %v612_v21 = vrot.slane %v3033_v46, 1 }
  0x55   : > { %1768 = vmatpush.bf16.msra.mxu2 %v2688_v50  ;;  %1826 = vmatpush.bf16.msra.mxu0 %v2704_v5  ;;  %v1060_v50 = vrot.slane %v3156_v43, 1  ;;  %v2702_v43 = vld [vmem:[%s3418_s1 + $0x218] sm:$0xff]  ;;  %v1070_v5 = vunpack.c.l.b16 %v1059_v49  ;;  %v1035_v9 = vor.u32 %v1034_v55, %v1030_v54  ;;  %v3256_v28 = vpack.c.b16 %v990_v14, %v989_v13  ;;  %v2422_v55 = vld [vmem:[#allocation3 + $0x10] sm:$0xf] }
  0x56   : > { %1797 = vmatpush.bf16.msra.mxu3 %v2696_v51  ;;  %1995 = vmatpush.bf16.msra.mxu1 %v2716_v10  ;;  %v2715_v51 = vld [vmem:[%s3421_s4 + $0x20] sm:$0xff]  ;;  %v1041_v18 = vrot.slane %v1039_v45, 1  ;;  %v1076_v44 = vunpack.c.l.b16 %v1062_v48  ;;  %v1136_v49 = vpack.c.b16 %v987_v24, %v985_v22  ;;  %v2424_v46 = vld [vmem:[#allocation3 + $0x18] sm:$0xf]  ;;  %v1445_v63 = vunpack.c.l.b16 %v2422_v55 }
  0x57   : > { %v1072_v6 = vunpack.c.l.b16 %v1060_v50  ;;  %v1073_v23 = vunpack.c.l.b16 %v1035_v9  ;;  %v1046_v33 = vshll.u32 %v3256_v28, 16  ;;  %v1044_v40 = vshrl.u32 %v3256_v28, 16 }
  0x58   : > { %v1042_v10 = vor.u32 %v1041_v18, %v1037_v58  ;;  %v627_v50 = vunpack.c.l.b16 %v612_v21  ;;  %v2423_v58 = vld [vmem:[#allocation3 + $0x14] sm:$0x1]  ;;  %v2711_v18 = vld [vmem:[%s3421_s4] sm:$0xff]  ;;  %v1447_v24 = vunpack.c.l.b16 %v2424_v46  ;;  %v1063_v0 = vrot.slane %v3256_v28, 1 }
  0x59   : > { %1769 = vmatpush.bf16.msra.mxu2 %v2687_v39  ;;  %1827 = vmatpush.bf16.msra.mxu0 %v2703_v32  ;;  %v3244_v1 = vld [vmem:[#allocation3 + $0x40] sm:$0xf]  ;;  %v611_v39 = vrot.slane %v2998_v16, 1  ;;  %v1135_v37 = vpack.c.b16 %v1072_v6, %v1070_v5  ;;  %v1048_v60 = vrot.slane %v1046_v33, 1  ;;  %v613_v32 = vrot.slane %v3041_v56, 1 }
  0x5a   : > { %1798 = vmatpush.bf16.msra.mxu3 %v2695_v38  ;;  %1996 = vmatpush.bf16.msra.mxu1 %v2715_v51  ;;  %v2277_v38 = vld [vmem:[#allocation3 + $0x44] sm:$0x1]  ;;  %v991_v17 = vunpack.c.l.b16 %v3244_v1  ;;  %v1075_v27 = vunpack.c.l.b16 %v1042_v10  ;;  %v2425_v56 = vld [vmem:[#allocation3 + $0x1c] sm:$0x1]  ;;  %v1446_v22 = vunpack.c.l.b16 %v2423_v58  ;;  %v1078_v5 = vunpack.c.l.b16 %v1063_v0 }
  0x5b   : > { %1306 = vmatmul.bf16.vlgmr.msrb.gmra.mxu3 %v1130_v34  ;;  %1364 = vmatmul.bf16.vlgmr.msrb.gmra.mxu1 %v1132_v36  ;;  %v992_v19 = vunpack.c.l.b16 %v2277_v38  ;;  %v625_v16 = vunpack.c.l.b16 %v611_v39  ;;  %v1061_v36 = vrot.slane %v3206_v41, 1  ;;  %v2699_v41 = vld [vmem:[%s3418_s1 + $0x200] sm:$0xff]  ;;  %v1049_v45 = vor.u32 %v1048_v60, %v1044_v40 }
  0x5c   : > { %v1137_v34 = vpack.c.b16 %v1075_v27, %v1073_v23  ;;  %v629_v51 = vunpack.c.l.b16 %v613_v32  ;;  %v1461_v39 = vpack.c.b16 %v1446_v22, %v1445_v63 }
  0x5d   : > { %1770 = vmatpush.bf16.msra.mxu2 %v2686_v8  ;;  %1828 = vmatpush.bf16.msra.mxu0 %v2702_v43  ;;  %v3260_v30 = vpack.c.b16 %v992_v19, %v991_v17  ;;  %v686_v26 = vpack.c.b16 %v625_v16, %v623_v20 }
  0x5e   : > { %1799 = vmatpush.bf16.msra.mxu3 %v2694_v15  ;;  %1997 = vmatpush.bf16.msra.mxu1 %v2714_v59  ;;  %v689_v43 = vpack.c.b16 %v629_v51, %v627_v50  ;;  %v1448_v59 = vunpack.c.l.b16 %v2425_v56  ;;  %v1472_v9 = vshll.u32 %v1461_v39, 16  ;;  %v1525_v14 = vrot.slane %v1461_v39, 1  ;;  %v2432_v50 = vld [vmem:[#allocation3 + $0x38] sm:$0xf]  ;;  %v2433_v51 = vld [vmem:[#allocation3 + $0x3c] sm:$0x1] }
  0x5f   : > { %917 = vmatmul.bf16.gmra.mxu2 %v683_v42  ;;  %v1053_v62 = vshll.u32 %v3260_v30, 16  ;;  %v1051_v8 = vshrl.u32 %v3260_v30, 16  ;;  %v1074_v42 = vunpack.c.l.b16 %v1061_v36  ;;  %v1064_v2 = vrot.slane %v3260_v30, 1 }
  0x60   : > { %1340 = vmatmul.bf16.gmra.mxu0 %v1134_v47  ;;  %v1462_v38 = vpack.c.b16 %v1448_v59, %v1447_v24  ;;  %v1470_v16 = vshrl.u32 %v1461_v39, 16  ;;  %v1474_v23 = vrot.slane %v1472_v9, 1  ;;  %v1534_v28 = vunpack.c.l.b16 %v1525_v14 }
  0x61   : > { %1771 = vmatpush.bf16.msra.mxu2 %v2685_v52  ;;  %1829 = vmatpush.bf16.msra.mxu0 %v2701_v29  ;;  %v1055_v15 = vrot.slane %v1053_v62, 1  ;;  %v1138_v52 = vpack.c.b16 %v1076_v44, %v1074_v42  ;;  %v1080_v6 = vunpack.c.l.b16 %v1064_v2  ;;  %v2427_v29 = vld [vmem:[#allocation3 + $0x24] sm:$0x1]  ;;  %v2430_v44 = vld [vmem:[#allocation3 + $0x30] sm:$0xf]  ;;  %v1455_v58 = vunpack.c.l.b16 %v2432_v50 }
  0x62   : > { %1800 = vmatpush.bf16.msra.mxu3 %v2693_v53  ;;  %1998 = vmatpush.bf16.msra.mxu1 %v2713_v3  ;;  %v1077_v53 = vunpack.c.l.b16 %v1049_v45  ;;  %v1479_v10 = vshll.u32 %v1462_v38, 16  ;;  %v1526_v19 = vrot.slane %v1462_v38, 1  ;;  %v1475_v3 = vor.u32 %v1474_v23, %v1470_v16  ;;  %v2431_v45 = vld [vmem:[#allocation3 + $0x34] sm:$0x1]  ;;  %v2435_v16 = vld [vmem:[#allocation3 + $0x44] sm:$0x1] }
  0x63   : > { %v1056_v47 = vor.u32 %v1055_v15, %v1051_v8  ;;  %v1141_v20 = vpack.c.b16 %v1080_v6, %v1078_v5  ;;  %v2707_v15 = vld [vmem:[%s3315_s27] sm:$0xff]  ;;  %v1456_v46 = vunpack.c.l.b16 %v2433_v51  ;;  %v2437_v23 = vld [vmem:[#allocation3 + $0x4c] sm:$0x1] }
  0x64   : > { %v1481_v27 = vrot.slane %v1479_v10, 1  ;;  %v1536_v30 = vunpack.c.l.b16 %v1526_v19  ;;  %v1533_v62 = vunpack.c.l.b16 %v1475_v3 }
  0x65   : > { %1772 = vmatpush.bf16.msra.mxu2 %v2684_v57  ;;  %1830 = vmatpush.bf16.msra.mxu0 %v2700_v35  ;;  %v1079_v54 = vunpack.c.l.b16 %v1056_v47  ;;  %v2426_v57 = vld [vmem:[#allocation3 + $0x20] sm:$0xf] }
  0x66   : > { %1801 = vmatpush.bf16.msra.mxu3 %v2692_v7  ;;  %1999 = vmatpush.bf16.msra.mxu1 %v2712_v25  ;;  %v1598_v7 = vpack.c.b16 %v1447_v24, %v1445_v63  ;;  %v1449_v1 = vunpack.c.l.b16 %v2426_v57  ;;  %v1466_v63 = vpack.c.b16 %v1456_v46, %v1455_v58 }
  0x67   : > { %v1140_v11 = vpack.c.b16 %v1079_v54, %v1077_v53  ;;  %v1453_v53 = vunpack.c.l.b16 %v2430_v44  ;;  %v1454_v54 = vunpack.c.l.b16 %v2431_v45 }
  0x68   : > { %v1507_v59 = vshll.u32 %v1466_v63, 16  ;;  %v1530_v2 = vrot.slane %v1466_v63, 1  ;;  %v1505_v9 = vshrl.u32 %v1466_v63, 16 }
  0x69   : > { %1773 = vmatpush.bf16.msra.mxu2 %v2683_v31  ;;  %1831 = vmatpush.bf16.msra.mxu0 %v2699_v41  ;;  %v2429_v31 = vld [vmem:[#allocation3 + $0x2c] sm:$0x1] }
  0x6a   : > { %1802 = vmatpush.bf16.msra.mxu3 %v2691_v12  ;;  %2000 = vmatpush.bf16.msra.mxu1 %v2711_v18  ;;  %v1452_v33 = vunpack.c.l.b16 %v2429_v31  ;;  %v1509_v10 = vrot.slane %v1507_v59, 1  ;;  %v1544_v19 = vunpack.c.l.b16 %v1530_v2  ;;  %v1460_v31 = vunpack.c.l.b16 %v2437_v23 }
  0x6b   : > { %1311 = vmatmul.bf16.gmra.mxu3 %v1133_v4  ;;  %1369 = vmatmul.bf16.gmra.mxu1 %v1135_v37  ;;  %v1139_v4 = vpack.c.b16 %v991_v17, %v989_v13  ;;  %v1477_v37 = vshrl.u32 %v1462_v38, 16  ;;  %v1450_v13 = vunpack.c.l.b16 %v2427_v29  ;;  %v2708_v38 = vld [vmem:[%s3315_s27 + $0x8] sm:$0xff]  ;;  %v1458_v29 = vunpack.c.l.b16 %v2435_v16 }
  0x6d   : > { %v1482_v61 = vor.u32 %v1481_v27, %v1477_v37  ;;  %v1463_v35 = vpack.c.b16 %v1450_v13, %v1449_v1  ;;  %v2436_v37 = vld [vmem:[#allocation3 + $0x48] sm:$0xf] }
  0x6f   : > { %922 = vmatmul.bf16.gmra.mxu2 %v686_v26  ;;  %v2428_v26 = vld [vmem:[#allocation3 + $0x28] sm:$0xf]  ;;  %v1535_v12 = vunpack.c.l.b16 %v1482_v61  ;;  %v1527_v48 = vrot.slane %v1463_v35, 1  ;;  %v1486_v60 = vshll.u32 %v1463_v35, 16  ;;  %v1484_v41 = vshrl.u32 %v1463_v35, 16 }
  0x70   : > { %1345 = vmatmul.bf16.gmra.mxu0 %v1137_v34  ;;  %v1600_v34 = vpack.c.b16 %v1536_v30, %v1534_v28  ;;  %v1451_v17 = vunpack.c.l.b16 %v2428_v26  ;;  %v1510_v28 = vor.u32 %v1509_v10, %v1505_v9  ;;  %v1459_v26 = vunpack.c.l.b16 %v2436_v37 }
  0x71   : > { %v1599_v40 = vpack.c.b16 %v1535_v12, %v1533_v62  ;;  %v1538_v32 = vunpack.c.l.b16 %v1527_v48  ;;  %v1488_v47 = vrot.slane %v1486_v60, 1  ;;  %v2709_v48 = vld [vmem:[%s3315_s27 + $0x10] sm:$0xff] }
  0x72   : > { %v1464_v36 = vpack.c.b16 %v1452_v33, %v1451_v17  ;;  %v1468_v13 = vpack.c.b16 %v1460_v31, %v1459_v26 }
  0x73   : > { %v1489_v56 = vor.u32 %v1488_v47, %v1484_v41 }
  0x74   : > { %v1528_v25 = vrot.slane %v1464_v36, 1  ;;  %v1493_v8 = vshll.u32 %v1464_v36, 16  ;;  %v1491_v21 = vshrl.u32 %v1464_v36, 16  ;;  %v1532_v33 = vrot.slane %v1468_v13, 1 }
  0x75   : > { %v1521_v36 = vshll.u32 %v1468_v13, 16 }
  0x76   : > { %v1540_v42 = vunpack.c.l.b16 %v1528_v25 }
  0x78   : > { %v1603_v55 = vpack.c.b16 %v1540_v42, %v1538_v32  ;;  %v1519_v32 = vshrl.u32 %v1468_v13, 16  ;;  %v1523_v42 = vrot.slane %v1521_v36, 1 }
  0x7b   : > { %1316 = vmatmul.bf16.gmra.mxu3 %v1136_v49  ;;  %1374 = vmatmul.bf16.gmra.mxu1 %v1138_v52  ;;  %v1495_v49 = vrot.slane %v1493_v8, 1  ;;  %v1601_v52 = vpack.c.b16 %v1451_v17, %v1449_v1  ;;  %v1548_v8 = vunpack.c.l.b16 %v1532_v33 }
  0x7d   : > { %v1496_v18 = vor.u32 %v1495_v49, %v1491_v21 }
  0x7f   : > { %927 = vmatmul.bf16.gmra.mxu2 %v689_v43  ;;  %v1465_v43 = vpack.c.b16 %v1454_v54, %v1453_v53  ;;  %v1539_v22 = vunpack.c.l.b16 %v1496_v18 }
  0x80   : > { %1350 = vmatmul.bf16.gmra.mxu0 %v1140_v11  ;;  %v1537_v11 = vunpack.c.l.b16 %v1489_v56 }
  0x81   : > { %v1500_v24 = vshll.u32 %v1465_v43, 16  ;;  %v1529_v0 = vrot.slane %v1465_v43, 1  ;;  %v1498_v5 = vshrl.u32 %v1465_v43, 16 }
  0x82   : > { %v1602_v39 = vpack.c.b16 %v1539_v22, %v1537_v11  ;;  %v2710_v11 = vld [vmem:[%s3315_s27 + $0x18] sm:$0xff] }
  0x83   : > { %v1502_v6 = vrot.slane %v1500_v24, 1  ;;  %v1542_v14 = vunpack.c.l.b16 %v1529_v0 }
  0x85   : > { %v1503_v27 = vor.u32 %v1502_v6, %v1498_v5  ;;  %v1606_v30 = vpack.c.b16 %v1544_v19, %v1542_v14 }
  0x87   : > { %v1541_v61 = vunpack.c.l.b16 %v1503_v27 }
  0x8b   : > { %1321 = vmatmul.bf16.gmra.mxu3 %v1139_v4  ;;  %1379 = vmatmul.bf16.gmra.mxu1 %v1141_v20  ;;  %v2434_v4 = vld [vmem:[#allocation3 + $0x40] sm:$0xf]  ;;  %v1604_v20 = vpack.c.b16 %v1455_v58, %v1453_v53 }
  0x8f   : > { %1774 = vmatmul.bf16.vlgmr.msra.gmra.mxu2 %v1598_v7  ;;  %v1457_v7 = vunpack.c.l.b16 %v2434_v4 }
  0x90   : > { %1832 = vmatmul.bf16.vlgmr.msra.gmra.mxu0 %v1600_v34  ;;  %v1543_v34 = vunpack.c.l.b16 %v1510_v28 }
  0x91   : > { %v1467_v1 = vpack.c.b16 %v1458_v29, %v1457_v7  ;;  %v1607_v44 = vpack.c.b16 %v1459_v26, %v1457_v7 }
  0x92   : > { %v1605_v62 = vpack.c.b16 %v1543_v34, %v1541_v61 }
  0x93   : > { %v1531_v17 = vrot.slane %v1467_v1, 1  ;;  %v1514_v35 = vshll.u32 %v1467_v1, 16 }
  0x95   : > { %v1546_v60 = vunpack.c.l.b16 %v1531_v17  ;;  %v1516_v21 = vrot.slane %v1514_v35, 1 }
  0x97   : > { %v1609_v47 = vpack.c.b16 %v1548_v8, %v1546_v60 }
  0x9b   : > { %1803 = vmatmul.bf16.vlgmr.msra.gmra.mxu3 %v1599_v40  ;;  %2001 = vmatmul.bf16.vlgmr.msra.gmra.mxu1 %v2707_v15  ;;  %v1512_v40 = vshrl.u32 %v1467_v1, 16 }
  0x9d   : > { %v1517_v51 = vor.u32 %v1516_v21, %v1512_v40 }
  0x9f   : > { %1779 = vmatmul.bf16.gmra.mxu2 %v1601_v52  ;;  %v1524_v52 = vor.u32 %v1523_v42, %v1519_v32  ;;  %v1545_v58 = vunpack.c.l.b16 %v1517_v51 }
  0xa0   : > { %1837 = vmatmul.bf16.gmra.mxu0 %v1603_v55 }
  0xa1   : > { %v1547_v46 = vunpack.c.l.b16 %v1524_v52 }
  0xa3   : > { %v1608_v43 = vpack.c.b16 %v1547_v46, %v1545_v58 }
  0xab   : > { %1808 = vmatmul.bf16.gmra.mxu3 %v1602_v39  ;;  %2006 = vmatmul.bf16.gmra.mxu1 %v2708_v38 }
  0xad   : > { %v855_v57 = vpop.f32.mrf.mxu0 }
  0xaf   : > { %1784 = vmatmul.bf16.gmra.mxu2 %v1604_v20 }
  0xb0   : > { %1842 = vmatmul.bf16.gmra.mxu0 %v1606_v30 }
  0xb2   : > { %v865_v3 = vpop.f32.mrf.mxu2 }
  0xb5   : > { %v857_v12 = vpop.f32.mrf.mxu0 }
  0xb8   : > { %v884_v25 = vpop.f32.mrf.mxu1 }
  0xb9   : > { %v885_v15 = vadd.f32 %v884_v25, %v855_v57 }
  0xba   : > { %v867_v41 = vpop.f32.mrf.mxu2 }
  0xbb   : > { %1813 = vmatmul.bf16.gmra.mxu3 %v1605_v62  ;;  %2011 = vmatmul.bf16.gmra.mxu1 %v2709_v48 }
  0xbd   : > { %v860_v50 = vpop.f32.mrf.mxu0 }
  0xbe   : > { %v894_v45 = vpop.f32.mrf.mxu3 }
  0xbf   : > { %v895_v49 = vadd.f32 %v894_v45, %v865_v3  ;;  %1789 = vmatmul.bf16.gmra.mxu2 %v1607_v44 }
  0xc0   : > { %v886_v53 = vpop.f32.mrf.mxu1  ;;  %1847 = vmatmul.bf16.gmra.mxu0 %v1609_v47 }
  0xc1   : > { %v887_v54 = vadd.f32 %v886_v53, %v857_v12 }
  0xc2   : > { %v870_v55 = vpop.f32.mrf.mxu2 }
  0xc5   : > { %v862_v63 = vpop.f32.mrf.mxu0 }
  0xc6   : > { %v896_v56 = vpop.f32.mrf.mxu3 }
  0xc7   : > { %v897_v18 = vadd.f32 %v896_v56, %v867_v41 }
  0xc8   : > { %v889_v22 = vpop.f32.mrf.mxu1 }
  0xc9   : > { %v890_v24 = vadd.f32 %v889_v22, %v860_v50 }
  0xca   : > { %v872_v59 = vpop.f32.mrf.mxu2 }
  0xcb   : > { %1818 = vmatmul.bf16.gmra.mxu3 %v1608_v43  ;;  %2016 = vmatmul.bf16.gmra.mxu1 %v2710_v11  ;;  %v3364_v43 = vld [vmem:[%s3419_s2] ss:$0 sm:$0xff] }
  0xcd   : > { %v1336_v39 = vpop.f32.mrf.mxu0 }
  0xce   : > { %v899_v0 = vpop.f32.mrf.mxu3 }
  0xcf   : > { %v900_v2 = vadd.f32 %v899_v0, %v870_v55 }
  0xd0   : > { %v891_v38 = vpop.f32.mrf.mxu1 }
  0xd1   : > { %v892_v5 = vadd.f32 %v891_v38, %v862_v63 }
  0xd2   : > { %v913_v6 = vpop.f32.mrf.mxu2 }
  0xd3   : > { %v914_v9 = vadd.f32 %v913_v6, %v885_v15 }
  0xd5   : > { %v1338_v19 = vpop.f32.mrf.mxu0 }
  0xd6   : > { %v901_v10 = vpop.f32.mrf.mxu3 }
  0xd7   : > { %v902_v14 = vadd.f32 %v901_v10, %v872_v59 }
  0xd8   : > { %v1365_v4 = vpop.f32.mrf.mxu1 }
  0xda   : > { %v915_v20 = vpop.f32.mrf.mxu2 }
  0xdb   : > { %v916_v16 = vadd.f32 %v915_v20, %v887_v54 }
  0xdd   : > { %v1341_v23 = vpop.f32.mrf.mxu0 }
  0xde   : > { %v1307_v37 = vpop.f32.mrf.mxu3 }
  0xdf   : > { %v1337_v50 = vadd.f32 %v1336_v39, %v1307_v37 }
  0xe0   : > { %v1367_v27 = vpop.f32.mrf.mxu1 }
  0xe1   : > { %v1366_v54 = vadd.f32 %v1365_v4, %v1337_v50 }
  0xe2   : > { %v918_v28 = vpop.f32.mrf.mxu2 }
  0xe3   : > { %v3321_v30 = vadd.f32 %v918_v28, %v890_v24  ;;  %v1393_v46 = vadd.f32 %v1366_v54, %v914_v9 }
  0xe5   : > { %v3323_v7 = vpop.f32.mrf.mxu0 }
  0xe6   : > { %v1309_v57 = vpop.f32.mrf.mxu3 }
  0xe7   : > { %v1339_v56 = vadd.f32 %v1338_v19, %v1309_v57 }
  0xe8   : > { %v1370_v29 = vpop.f32.mrf.mxu1 }
  0xe9   : > { %v1368_v24 = vadd.f32 %v1367_v27, %v1339_v56 }
  0xea   : > { %v920_v26 = vpop.f32.mrf.mxu2 }
  0xeb   : > { %v3325_v31 = vadd.f32 %v920_v26, %v892_v5  ;;  %v1394_v5 = vadd.f32 %v1368_v24, %v916_v16 }
  0xed   : > { %v3327_v61 = vpop.f32.mrf.mxu0 }
  0xee   : > { %v1312_v3 = vpop.f32.mrf.mxu3 }
  0xef   : > { %v1342_v6 = vadd.f32 %v1341_v23, %v1312_v3 }
  0xf0   : > { %v3329_v34 = vpop.f32.mrf.mxu1 }
  0xf1   : > { %v1371_v4 = vadd.f32 %v1370_v29, %v1342_v6 }
  0xf2   : > { %v923_v1 = vpop.f32.mrf.mxu2 }
  0xf3   : > { %v3331_v13 = vadd.f32 %v923_v1, %v895_v49  ;;  %v1395_v1 = vadd.f32 %v1371_v4, %v3321_v30 }
  0xf5   : > { %v3333_v33 = vpop.f32.mrf.mxu0 }
  0xf6   : > { %v1314_v17 = vpop.f32.mrf.mxu3 }
  0xf8   : > { %v3335_v62 = vpop.f32.mrf.mxu1 }
  0xfa   : > { %v925_v12 = vpop.f32.mrf.mxu2 }
  0xfb   : > { %v3337_v35 = vadd.f32 %v925_v12, %v897_v18  ;;  %v1344_v12 = vadd.f32 %v3323_v7, %v1314_v17 }
  0xfd   : > { %v3341_v48 = vpop.f32.mrf.mxu0 }
  0xfe   : > { %v3339_v36 = vpop.f32.mrf.mxu3 }
  0xff   : > { %v1347_v30 = vadd.f32 %v3327_v61, %v3339_v36 }
 0x100   : > { %v3343_v25 = vpop.f32.mrf.mxu1 }
 0x102   : > { %v928_v40 = vpop.f32.mrf.mxu2 }
 0x103   : > { %v3345_v60 = vadd.f32 %v928_v40, %v900_v2  ;;  %v1373_v40 = vadd.f32 %v3329_v34, %v1344_v12  ;;  %v1376_v34 = vadd.f32 %v3335_v62, %v1347_v30 }
 0x105   : > { %v3349_v15 = vpop.f32.mrf.mxu0 }
 0x106   : > { %v3347_v8 = vpop.f32.mrf.mxu3 }
 0x108   : > { %v3351_v41 = vpop.f32.mrf.mxu1 }
 0x10a   : > { %v930_v21 = vpop.f32.mrf.mxu2 }
 0x10b   : > { %v3353_v32 = vadd.f32 %v930_v21, %v902_v14 }
 0x10d   : > { %v1833_v45 = vpop.f32.mrf.mxu0 }
 0x10e   : > { %v3355_v42 = vpop.f32.mrf.mxu3 }
 0x110   : > { %v3357_v44 = vpop.f32.mrf.mxu1 }
 0x112   : > { %v1775_v47 = vpop.f32.mrf.mxu2 }
 0x115   : > { %v1835_v53 = vpop.f32.mrf.mxu0 }
 0x116   : > { %v3359_v49 = vpop.f32.mrf.mxu3 }
 0x118   : > { %v2002_v51 = vpop.f32.mrf.mxu1 }
 0x11a   : > { %v1777_v52 = vpop.f32.mrf.mxu2 }
 0x11d   : > { %v1838_v2 = vpop.f32.mrf.mxu0 }
 0x11e   : > { %v1804_v55 = vpop.f32.mrf.mxu3 }
 0x11f   : > { %v1805_v58 = vadd.f32 %v1804_v55, %v1775_v47 }
 0x120   : > { %v2004_v63 = vpop.f32.mrf.mxu1 }
 0x121   : > { %v1834_v18 = vadd.f32 %v1833_v45, %v1805_v58 }
 0x122   : > { %v1780_v22 = vpop.f32.mrf.mxu2 }
 0x123   : > { %v1861_v11 = vadd.f32 %v1834_v18, %v1393_v46 }
 0x125   : > { %v1889_v59 = vadd.f32 %v3364_v43, %v1861_v11  ;;  %v1840_v26 = vpop.f32.mrf.mxu0 }
 0x126   : > { %v1806_v0 = vpop.f32.mrf.mxu3 }
 0x127   : > { %v2022_v39 = vadd.f32 %v2002_v51, %v1889_v59  ;;  %v1807_v38 = vadd.f32 %v1806_v0, %v1777_v52  ;;  %v1396_v52 = vadd.f32 %v1373_v40, %v3325_v31  ;;  %v1349_v31 = vadd.f32 %v3333_v33, %v3347_v8 }
 0x128   : > { %v2007_v19 = vpop.f32.mrf.mxu1 }
 0x129   : > { %v2030_v9 = vmax.f32 %v2022_v39, 0.0  ;;  %v1836_v10 = vadd.f32 %v1835_v53, %v1807_v38  ;;  %v1378_v62 = vadd.f32 %v3343_v25, %v1349_v31 }
 0x12a   : > { %v1782_v37 = vpop.f32.mrf.mxu2 }
 0x12b   : > { %2038 = vst [vmem:[%s3371_s8] sm:$0xff] %v2030_v9  ;;  %v1862_v14 = vadd.f32 %v1836_v10, %v1394_v5  ;;  %v1398_v38 = vadd.f32 %v1378_v62, %v3337_v35 }
 0x12d   : > { %v1890_v20 = vadd.f32 %v3364_v43, %v1862_v14  ;;  %v1843_v53 = vpop.f32.mrf.mxu0 }
 0x12e   : > { %v1809_v27 = vpop.f32.mrf.mxu3 }
 0x12f   : > { %v2023_v28 = vadd.f32 %v2004_v63, %v1890_v20  ;;  %v1810_v57 = vadd.f32 %v1809_v27, %v1780_v22  ;;  %v1397_v63 = vadd.f32 %v1376_v34, %v3331_v13  ;;  %v1352_v13 = vadd.f32 %v3341_v48, %v3355_v42 }
 0x130   : > { %v2009_v45 = vpop.f32.mrf.mxu1  ;;  %v1354_v48 = vadd.f32 %v3349_v15, %v3359_v49 }
 0x131   : > { %v2031_v16 = vmax.f32 %v2023_v28, 0.0  ;;  %v1839_v23 = vadd.f32 %v1838_v2, %v1810_v57  ;;  %v1381_v10 = vadd.f32 %v3351_v41, %v1352_v13 }
 0x132   : > { %v1785_v51 = vpop.f32.mrf.mxu2  ;;  %v1383_v57 = vadd.f32 %v3357_v44, %v1354_v48 }
 0x133   : > { %2039 = vst [vmem:[%s3371_s8 + $0x8] sm:$0xff] %v2031_v16  ;;  %v1863_v3 = vadd.f32 %v1839_v23, %v1395_v1  ;;  %v1399_v35 = vadd.f32 %v1381_v10, %v3345_v60 }
 0x134   : > { %v1400_v60 = vadd.f32 %v1383_v57, %v3353_v32 }
 0x135   : > { %v1891_v29 = vadd.f32 %v3364_v43, %v1863_v3  ;;  %v1845_v24 = vpop.f32.mrf.mxu0 }
 0x136   : > { %v1811_v21 = vpop.f32.mrf.mxu3 }
 0x137   : > { %v2024_v47 = vadd.f32 %v2007_v19, %v1891_v29  ;;  %v1812_v50 = vadd.f32 %v1811_v21, %v1782_v37 }
 0x138   : > { %v2012_v18 = vpop.f32.mrf.mxu1 }
 0x139   : > { %v2032_v7 = vmax.f32 %v2024_v47, 0.0  ;;  %v1841_v17 = vadd.f32 %v1840_v26, %v1812_v50 }
 0x13a   : > { %v1787_v11 = vpop.f32.mrf.mxu2 }
 0x13b   : > { %2040 = vst [vmem:[%s3371_s8 + $0x10] sm:$0xff] %v2032_v7  ;;  %v1864_v54 = vadd.f32 %v1841_v17, %v1396_v52 }
 0x13d   : > { %v1892_v55 = vadd.f32 %v3364_v43, %v1864_v54  ;;  %v1848_v14 = vpop.f32.mrf.mxu0 }
 0x13e   : > { %v1814_v58 = vpop.f32.mrf.mxu3 }
 0x13f   : > { %v2025_v46 = vadd.f32 %v2009_v45, %v1892_v55  ;;  %v1815_v56 = vadd.f32 %v1814_v58, %v1785_v51 }
 0x140   : > { %v2014_v5 = vpop.f32.mrf.mxu1 }
 0x141   : > { %v2033_v61 = vmax.f32 %v2025_v46, 0.0  ;;  %v1844_v36 = vadd.f32 %v1843_v53, %v1815_v56 }
 0x142   : > { %v1790_v9 = vpop.f32.mrf.mxu2 }
 0x143   : > { %2041 = vst [vmem:[%s3371_s8 + $0x18] sm:$0xff] %v2033_v61  ;;  %v1865_v22 = vadd.f32 %v1844_v36, %v1397_v63 }
 0x145   : > { %v1893_v59 = vadd.f32 %v3364_v43, %v1865_v22  ;;  %v1850_v23 = vpop.f32.mrf.mxu0 }
 0x146   : > { %v1816_v0 = vpop.f32.mrf.mxu3 }
 0x147   : > { %v2026_v2 = vadd.f32 %v2012_v18, %v1893_v59  ;;  %v1817_v39 = vadd.f32 %v1816_v0, %v1787_v11 }
 0x148   : > { %v2017_v28 = vpop.f32.mrf.mxu1 }
 0x149   : > { %v2034_v33 = vmax.f32 %v2026_v2, 0.0  ;;  %v1846_v8 = vadd.f32 %v1845_v24, %v1817_v39 }
 0x14a   : > { %v1792_v26 = vpop.f32.mrf.mxu2 }
 0x14b   : > { %2042 = vst [vmem:[%s3371_s8 + $0x20] sm:$0xff] %v2034_v33  ;;  %v1866_v6 = vadd.f32 %v1846_v8, %v1398_v38 }
 0x14d   : > { %v1894_v25 = vadd.f32 %v3364_v43, %v1866_v6 }
 0x14e   : > { %v1819_v19 = vpop.f32.mrf.mxu3 }
 0x14f   : > { %v2027_v4 = vadd.f32 %v2014_v5, %v1894_v25  ;;  %v1820_v20 = vadd.f32 %v1819_v19, %v1790_v9 }
 0x150   : > { %v2019_v29 = vpop.f32.mrf.mxu1 }
 0x151   : > { %v2035_v42 = vmax.f32 %v2027_v4, 0.0  ;;  %v1849_v37 = vadd.f32 %v1848_v14, %v1820_v20 }
 0x153   : > { %2043 = vst [vmem:[%s3371_s8 + $0x28] sm:$0xff] %v2035_v42  ;;  %v1867_v27 = vadd.f32 %v1849_v37, %v1399_v35 }
 0x155   : > { %v1895_v41 = vadd.f32 %v3364_v43, %v1867_v27 }
 0x156   : > { %v1821_v1 = vpop.f32.mrf.mxu3 }
 0x157   : > { %v2028_v12 = vadd.f32 %v2017_v28, %v1895_v41  ;;  %v1822_v16 = vadd.f32 %v1821_v1, %v1792_v26 }
 0x159   : > { %v2036_v3 = vmax.f32 %v2028_v12, 0.0  ;;  %v1851_v15 = vadd.f32 %v1850_v23, %v1822_v16 }
 0x15b   : > { %2044 = vst [vmem:[%s3371_s8 + $0x30] sm:$0xff] %v2036_v3  ;;  %v1868_v49 = vadd.f32 %v1851_v15, %v1400_v60 }
 0x15d   : > { %v1896_v40 = vadd.f32 %v3364_v43, %v1868_v49 }
 0x15f   : > { %v2029_v21 = vadd.f32 %v2019_v29, %v1896_v40 }
 0x161   : > { %v2037_v45 = vmax.f32 %v2029_v21, 0.0 }
 0x163   : > { %2045 = vst [vmem:[%s3371_s8 + $0x38] sm:$0xff] %v2037_v45 }
 0x164 PF: > { %s15_s20 = sadd.s32 1, %s2802_s20   ;;  %s3427_s18 = smov %s2798_s19 }
 0x165   : > { %p12_p5 = scmp.ge.s32.totalorder %s15_s20, 4   ;;  %s3428_s19 = smov %s3430_s21 }
 0x167   :  { %14 = sbr.rel (!%p12_p5) target bundleno = 2 (0x2), region = 82 }

</bundles_post_ra>
